<compile_context>
chip_gen: v7x
topology: tpu7x:2x2x1
jax: 0.10.0
libtpu: 0.0.40
codegen_flags: <defaults>
</compile_context>

<pallas_src>
import jax
import jax.numpy as jnp
from jax import lax
from jax.experimental import pallas as pl
from jax.experimental.pallas import tpu as pltpu
import numpy as np


# ----------------------------- Pallas kernel -----------------------------

def fused_unit_kernel(xs_ref, scale1_ref, shift1_ref, w1_ref, scale2_ref,
                      shift2_ref, w2_ref, wd_ref, out_ref, yspad_ref, zpad_ref):
    # xs_ref        : (1, Ho, Wo, Cs)     space-to-depth input, Cs = s*s*Cin, chan order (rp, cp, ci)
    # scale1/shift1 : (1, Cs)             BN1 inference affine (tiled over the s*s parities)
    # w1_ref        : (WB*WB*Cs, Cout_p)  conv1 (3x3 stride s) re-expressed over the s2d layout
    # scale2/shift2 : (1, Cout_p)         BN2 inference affine (lane-padded)
    # w2_ref        : (9*Cout_p, Cout_p)  conv2 (3x3 stride 1) as a single matmul matrix
    # wd_ref        : (Cin, Cout_p)       1x1 stride-s downsample weights
    # out_ref       : (1, Ho, Wo, Cout_p)
    # yspad_ref     : VMEM (Ho+1+hb, Wo+1+hb, Cs)  zero-halo BN1+ReLU activations
    # zpad_ref      : VMEM (Ho+2, Wo+2, Cout_p)    zero-halo conv2 input
    f32 = jnp.float32
    _, Ho, Wo, Cs = xs_ref.shape
    Cout_p = out_ref.shape[-1]
    Cin = wd_ref.shape[0]
    P = Ho * Wo
    Hp, Wp = yspad_ref.shape[0], yspad_ref.shape[1]
    WB = Hp - Ho + 1                      # conv1 tap window in block space (2 if stride>1 else 3)
    mxu_dt = w1_ref.dtype                 # bf16 (perf path) or f32 (validation path)

    # Zero ONLY the 1-px halo strips, every step (interior is fully rewritten below; doing
    # it per-step keeps this correct when the grid is sharded across TensorCores).
    zrow = jnp.zeros((1, Wp, Cs), f32)
    zcol = jnp.zeros((Hp, 1, Cs), f32)
    yspad_ref[0:1, :, :] = zrow
    yspad_ref[:, 0:1, :] = zcol
    if WB == 3:                           # stride == 1 also needs bottom/right halo
        yspad_ref[Hp - 1:Hp, :, :] = zrow
        yspad_ref[:, Wp - 1:Wp, :] = zcol
    zrow2 = jnp.zeros((1, Wo + 2, Cout_p), f32)
    zcol2 = jnp.zeros((Ho + 2, 1, Cout_p), f32)
    zpad_ref[0:1, :, :] = zrow2
    zpad_ref[Ho + 1:Ho + 2, :, :] = zrow2
    zpad_ref[:, 0:1, :] = zcol2
    zpad_ref[:, Wo + 1:Wo + 2, :] = zcol2

    # BN1 + ReLU (eval-mode affine), fused; written once into the padded VMEM scratch.
    ys = jnp.maximum(xs_ref[0] * scale1_ref[...] + shift1_ref[...], 0.0)   # (Ho, Wo, Cs) f32
    yspad_ref[1:1 + Ho, 1:1 + Wo, :] = ys

    # Downsample branch: 1x1 stride-s conv == matmul on the parity-(0,0) channel slice of ys.
    yd = ys[:, :, :Cin].reshape(P, Cin).astype(mxu_dt)
    acc = jnp.dot(yd, wd_ref[...], preferred_element_type=f32)             # (P, Cout_p)

    # conv1 (3x3, stride s, pad 1): WB*WB shifted-window matmuls over the s2d layout
    # (kept as separate dots because the tap lane width s*s*Cin is not 128-aligned).
    t = jnp.zeros((P, Cout_p), f32)
    for db in range(WB):
        for dw in range(WB):
            tap = yspad_ref[db:db + Ho, dw:dw + Wo, :].reshape(P, Cs).astype(mxu_dt)
            col = (db * WB + dw) * Cs
            t = t + jnp.dot(tap, w1_ref[col:col + Cs, :], preferred_element_type=f32)

    # BN2 + ReLU; Dropout == identity in eval mode.
    z = jnp.maximum(t * scale2_ref[...] + shift2_ref[...], 0.0)
    zpad_ref[1:1 + Ho, 1:1 + Wo, :] = z.reshape(Ho, Wo, Cout_p)

    # conv2 (3x3, stride 1, pad 1): ONE matmul over the 9 lane-aligned shifted windows.
    taps2 = [zpad_ref[kh:kh + Ho, kw:kw + Wo, :].reshape(P, Cout_p)
             for kh in range(3) for kw in range(3)]
    patches2 = jnp.concatenate(taps2, axis=-1).astype(mxu_dt)              # (P, 9*Cout_p)
    acc = acc + jnp.dot(patches2, w2_ref[...], preferred_element_type=f32)

    out_ref[...] = acc.reshape(1, Ho, Wo, Cout_p)                          # lane-dense store


# ----------------------------- wrapper (layout glue only) -----------------------------

def downsample_unit_forward(x_nchw, params, *, stride, eps=1e-5, mxu_dtype=jnp.bfloat16):
    s = int(stride)
    N, Cin, H, W = x_nchw.shape
    Cout = params["w1"].shape[0]
    assert H % s == 0 and W % s == 0, "spatial dims must be divisible by stride"
    Ho, Wo = H // s, W // s                       # == (H + 2 - 3)//s + 1 when H % s == 0
    Cs = s * s * Cin
    hb = 1 // s                                   # extra bottom/right halo (only when stride == 1)
    WB = 2 + hb                                   # conv1 window extent in s2d block space
    LANE = 128
    Cout_p = ((Cout + LANE - 1) // LANE) * LANE   # lane-dense output channels

    # Fold BN running stats into inference affines.
    scale1 = params["gamma1"] / jnp.sqrt(params["var1"] + eps)
    shift1 = params["beta1"] - params["mean1"] * scale1
    scale2 = params["gamma2"] / jnp.sqrt(params["var2"] + eps)
    shift2 = params["beta2"] - params["mean2"] * scale2

    # Layout glue: NCHW -> space-to-depth NHWC (N, Ho, Wo, s*s*Cin); channel order (rp, cp, ci).
    # This is the ONLY HBM-sized wrapper op (replaces the old transpose + BN pass + im2col + pad).
    x = x_nchw.astype(jnp.float32)
    xs = x.reshape(N, Cin, Ho, s, Wo, s)
    xs = jnp.transpose(xs, (0, 2, 4, 3, 5, 1)).reshape(N, Ho, Wo, Cs)

    scale1s = jnp.tile(scale1, s * s).reshape(1, Cs)
    shift1s = jnp.tile(shift1, s * s).reshape(1, Cs)

    # conv1 OIHW weights -> (WB*WB*Cs, Cout_p) matrix matching the kernel's tap/channel order.
    w1p = jnp.zeros((WB, WB, s, s, Cin, Cout_p), jnp.float32)
    for kh in range(3):
        db, rp = divmod(kh - 1, s)
        for kw in range(3):
            dw, cp = divmod(kw - 1, s)
            w1p = w1p.at[db + 1, dw + 1, rp, cp, :, :Cout].set(params["w1"][:, :, kh, kw].T)
    w1p = w1p.reshape(WB * WB * Cs, Cout_p).astype(mxu_dtype)

    # conv2 OIHW weights -> single (9*Cout_p, Cout_p) matrix.
    w2p = jnp.zeros((3, 3, Cout_p, Cout_p), jnp.float32)
    for kh in range(3):
        for kw in range(3):
            w2p = w2p.at[kh, kw, :Cout, :Cout].set(params["w2"][:, :, kh, kw].T)
    w2p = w2p.reshape(9 * Cout_p, Cout_p).astype(mxu_dtype)

    wdp = jnp.zeros((Cin, Cout_p), jnp.float32).at[:, :Cout].set(params["wd"][:, :, 0, 0].T)
    wdp = wdp.astype(mxu_dtype)

    scale2p = jnp.zeros((1, Cout_p), jnp.float32).at[0, :Cout].set(scale2)
    shift2p = jnp.zeros((1, Cout_p), jnp.float32).at[0, :Cout].set(shift2)

    out_p = pl.pallas_call(
        fused_unit_kernel,
        out_shape=jax.ShapeDtypeStruct((N, Ho, Wo, Cout_p), jnp.float32),
        grid=(N,),
        in_specs=[
            pl.BlockSpec((1, Ho, Wo, Cs), lambda n: (n, 0, 0, 0)),
            pl.BlockSpec((1, Cs), lambda n: (0, 0)),
            pl.BlockSpec((1, Cs), lambda n: (0, 0)),
            pl.BlockSpec((WB * WB * Cs, Cout_p), lambda n: (0, 0)),
            pl.BlockSpec((1, Cout_p), lambda n: (0, 0)),
            pl.BlockSpec((1, Cout_p), lambda n: (0, 0)),
            pl.BlockSpec((9 * Cout_p, Cout_p), lambda n: (0, 0)),
            pl.BlockSpec((Cin, Cout_p), lambda n: (0, 0)),
        ],
        out_specs=pl.BlockSpec((1, Ho, Wo, Cout_p), lambda n: (n, 0, 0, 0)),
        scratch_shapes=[
            pltpu.VMEM((Ho + 1 + hb, Wo + 1 + hb, Cs), jnp.float32),
            pltpu.VMEM((Ho + 2, Wo + 2, Cout_p), jnp.float32),
        ],
        compiler_params=pltpu.CompilerParams(
            dimension_semantics=("parallel",),            # batch axis -> both v7x TensorCores
            vmem_limit_bytes=64 * 1024 * 1024),
    )(xs, scale1s, shift1s, w1p, scale2p, shift2p, w2p, wdp)

    # Layout glue back: crop the channel lane padding, NHWC -> NCHW.
    return jnp.transpose(out_p[..., :Cout], (0, 3, 1, 2))


# ----------------------------- pure-JAX reference -----------------------------

def ref_forward(x_nchw, params, stride):
    eps = 1e-5
    scale1 = params["gamma1"] / jnp.sqrt(params["var1"] + eps)
    shift1 = params["beta1"] - params["mean1"] * scale1
    scale2 = params["gamma2"] / jnp.sqrt(params["var2"] + eps)
    shift2 = params["beta2"] - params["mean2"] * scale2
    dn = ("NCHW", "OIHW", "NCHW")
    hp = lax.Precision.HIGHEST

    x = jnp.maximum(x_nchw * scale1[None, :, None, None] + shift1[None, :, None, None], 0.0)
    b = lax.conv_general_dilated(x, params["w1"], (stride, stride), [(1, 1), (1, 1)],
                                 dimension_numbers=dn, precision=hp)
    b = jnp.maximum(b * scale2[None, :, None, None] + shift2[None, :, None, None], 0.0)
    b = lax.conv_general_dilated(b, params["w2"], (1, 1), [(1, 1), (1, 1)],
                                 dimension_numbers=dn, precision=hp)
    d = lax.conv_general_dilated(x, params["wd"], (stride, stride), [(0, 0), (0, 0)],
                                 dimension_numbers=dn, precision=hp)
    return b + d


# ----------------------------- main -----------------------------

if __name__ == "__main__":
    N, Cin, Cout, H, W, stride, dropout = 2, 4, 8, 16, 16, 2, 0.0   # dropout=identity (eval)

    key = jax.random.PRNGKey(0)
    ks = jax.random.split(key, 12)
    x = jax.random.normal(ks[0], (N, Cin, H, W), jnp.float32)

    params = dict(
        w1=0.1 * jax.random.normal(ks[1], (Cout, Cin, 3, 3), jnp.float32),
        w2=0.1 * jax.random.normal(ks[2], (Cout, Cout, 3, 3), jnp.float32),
        wd=0.1 * jax.random.normal(ks[3], (Cout, Cin, 1, 1), jnp.float32),
        gamma1=1.0 + 0.1 * jax.random.normal(ks[4], (Cin,), jnp.float32),
        beta1=0.1 * jax.random.normal(ks[5], (Cin,), jnp.float32),
        mean1=0.1 * jax.random.normal(ks[6], (Cin,), jnp.float32),
        var1=0.5 + jnp.abs(jax.random.normal(ks[7], (Cin,), jnp.float32)),
        gamma2=1.0 + 0.1 * jax.random.normal(ks[8], (Cout,), jnp.float32),
        beta2=0.1 * jax.random.normal(ks[9], (Cout,), jnp.float32),
        mean2=0.1 * jax.random.normal(ks[10], (Cout,), jnp.float32),
        var2=0.5 + jnp.abs(jax.random.normal(ks[11], (Cout,), jnp.float32)),
    )

    fwd = jax.jit(downsample_unit_forward, static_argnames=("stride", "mxu_dtype"))
    ref = jax.block_until_ready(ref_forward(x, params, stride))

    # f32 MXU path: tight check against the HIGHEST-precision reference.
    out_f32 = jax.block_until_ready(fwd(x, params, stride=stride, mxu_dtype=jnp.float32))
    assert out_f32.shape == ref.shape == (N, Cout, H // stride, W // stride), (out_f32.shape, ref.shape)
    np.testing.assert_allclose(np.asarray(out_f32), np.asarray(ref), rtol=5e-3, atol=5e-3)

    # bf16 MXU operands (default perf path per review); tolerance loosened for bf16 rounding.
    out_bf16 = jax.block_until_ready(fwd(x, params, stride=stride))
    np.testing.assert_allclose(np.asarray(out_bf16), np.asarray(ref), rtol=2e-2, atol=2e-2)

    print("KERNEL_OK")
</pallas_src>

<mosaic_0001>
module attributes {stable_mosaic.version = 11 : i64} {
  func.func @fused_unit_kernel(%arg0: i32, %arg1: memref<1x8x8x16xf32, #tpu.memory_space<vmem>>, %arg2: memref<1x16xf32, #tpu.memory_space<vmem>>, %arg3: memref<1x16xf32, #tpu.memory_space<vmem>>, %arg4: memref<64x128xf32, #tpu.memory_space<vmem>>, %arg5: memref<1x128xf32, #tpu.memory_space<vmem>>, %arg6: memref<1x128xf32, #tpu.memory_space<vmem>>, %arg7: memref<1152x128xf32, #tpu.memory_space<vmem>>, %arg8: memref<4x128xf32, #tpu.memory_space<vmem>>, %arg9: memref<1x8x8x128xf32, #tpu.memory_space<vmem>>, %arg10: memref<9x9x16xf32, #tpu.memory_space<vmem>>, %arg11: memref<10x10x128xf32, #tpu.memory_space<vmem>>) attributes {dimension_semantics = [#tpu.dimension_semantics<parallel>], iteration_bounds = array<i64: 2>, scalar_prefetch = 0 : i64, scratch_operands = 2 : i64, tpu.core_type = #tpu.core_type<tc>, window_params = [{transform_indices = @transform_0, window_bounds = array<i64: 1, 8, 8, 16>}, {pipeline_mode = #tpu.pipeline_mode<synchronous>, transform_indices = @transform_1, window_bounds = array<i64: 1, 16>}, {pipeline_mode = #tpu.pipeline_mode<synchronous>, transform_indices = @transform_2, window_bounds = array<i64: 1, 16>}, {pipeline_mode = #tpu.pipeline_mode<synchronous>, transform_indices = @transform_3, window_bounds = array<i64: 64, 128>}, {pipeline_mode = #tpu.pipeline_mode<synchronous>, transform_indices = @transform_4, window_bounds = array<i64: 1, 128>}, {pipeline_mode = #tpu.pipeline_mode<synchronous>, transform_indices = @transform_5, window_bounds = array<i64: 1, 128>}, {pipeline_mode = #tpu.pipeline_mode<synchronous>, transform_indices = @transform_6, window_bounds = array<i64: 1152, 128>}, {pipeline_mode = #tpu.pipeline_mode<synchronous>, transform_indices = @transform_7, window_bounds = array<i64: 4, 128>}, {transform_indices = @transform_8, window_bounds = array<i64: 1, 8, 8, 128>}]} {
    %cst = arith.constant 0.000000e+00 : f32
    %0 = vector.broadcast %cst : f32 to vector<1x9x16xf32>
    %cst_0 = arith.constant 0.000000e+00 : f32
    %1 = vector.broadcast %cst_0 : f32 to vector<9x1x16xf32>
    %c0 = arith.constant 0 : index
    %c0_1 = arith.constant 0 : index
    %c0_2 = arith.constant 0 : index
    %2 = vector.load %arg10[%c0, %c0_1, %c0_2] : memref<9x9x16xf32, #tpu.memory_space<vmem>>, vector<1x9x16xf32>
    tpu.vector_store %arg10[%c0, %c0_1, %c0_2], %0 {strides = array<i32>} : memref<9x9x16xf32, #tpu.memory_space<vmem>>, vector<1x9x16xf32>,
    %c0_3 = arith.constant 0 : index
    %c0_4 = arith.constant 0 : index
    %c0_5 = arith.constant 0 : index
    %3 = vector.load %arg10[%c0_3, %c0_4, %c0_5] : memref<9x9x16xf32, #tpu.memory_space<vmem>>, vector<9x1x16xf32>
    tpu.vector_store %arg10[%c0_3, %c0_4, %c0_5], %1 {strides = array<i32>} : memref<9x9x16xf32, #tpu.memory_space<vmem>>, vector<9x1x16xf32>,
    %cst_6 = arith.constant 0.000000e+00 : f32
    %4 = vector.broadcast %cst_6 : f32 to vector<1x10x128xf32>
    %cst_7 = arith.constant 0.000000e+00 : f32
    %5 = vector.broadcast %cst_7 : f32 to vector<10x1x128xf32>
    %c0_8 = arith.constant 0 : index
    %c0_9 = arith.constant 0 : index
    %c0_10 = arith.constant 0 : index
    %6 = vector.load %arg11[%c0_8, %c0_9, %c0_10] : memref<10x10x128xf32, #tpu.memory_space<vmem>>, vector<1x10x128xf32>
    tpu.vector_store %arg11[%c0_8, %c0_9, %c0_10], %4 {strides = array<i32>} : memref<10x10x128xf32, #tpu.memory_space<vmem>>, vector<1x10x128xf32>,
    %c9 = arith.constant 9 : index
    %c0_11 = arith.constant 0 : index
    %c0_12 = arith.constant 0 : index
    %7 = vector.load %arg11[%c9, %c0_11, %c0_12] : memref<10x10x128xf32, #tpu.memory_space<vmem>>, vector<1x10x128xf32>
    tpu.vector_store %arg11[%c9, %c0_11, %c0_12], %4 {strides = array<i32>} : memref<10x10x128xf32, #tpu.memory_space<vmem>>, vector<1x10x128xf32>,
    %c0_13 = arith.constant 0 : index
    %c0_14 = arith.constant 0 : index
    %c0_15 = arith.constant 0 : index
    %8 = vector.load %arg11[%c0_13, %c0_14, %c0_15] : memref<10x10x128xf32, #tpu.memory_space<vmem>>, vector<10x1x128xf32>
    tpu.vector_store %arg11[%c0_13, %c0_14, %c0_15], %5 {strides = array<i32>} : memref<10x10x128xf32, #tpu.memory_space<vmem>>, vector<10x1x128xf32>,
    %c0_16 = arith.constant 0 : index
    %c9_17 = arith.constant 9 : index
    %c0_18 = arith.constant 0 : index
    %9 = vector.load %arg11[%c0_16, %c9_17, %c0_18] : memref<10x10x128xf32, #tpu.memory_space<vmem>>, vector<10x1x128xf32>
    tpu.vector_store %arg11[%c0_16, %c9_17, %c0_18], %5 {strides = array<i32>} : memref<10x10x128xf32, #tpu.memory_space<vmem>>, vector<10x1x128xf32>,
    %c0_19 = arith.constant 0 : index
    %c0_20 = arith.constant 0 : index
    %c0_21 = arith.constant 0 : index
    %c0_22 = arith.constant 0 : index
    %10 = vector.load %arg1[%c0_19, %c0_20, %c0_21, %c0_22] : memref<1x8x8x16xf32, #tpu.memory_space<vmem>>, vector<1x8x8x16xf32>
    %11 = vector.shape_cast %10 : vector<1x8x8x16xf32> to vector<8x8x16xf32>
    %c0_23 = arith.constant 0 : index
    %c0_24 = arith.constant 0 : index
    %12 = vector.load %arg2[%c0_23, %c0_24] : memref<1x16xf32, #tpu.memory_space<vmem>>, vector<1x16xf32>
    %13 = vector.shape_cast %12 : vector<1x16xf32> to vector<1x1x16xf32>
    %14 = vector.broadcast %13 : vector<1x1x16xf32> to vector<8x8x16xf32>
    %15 = arith.mulf %11, %14 : vector<8x8x16xf32>
    %c0_25 = arith.constant 0 : index
    %c0_26 = arith.constant 0 : index
    %16 = vector.load %arg3[%c0_25, %c0_26] : memref<1x16xf32, #tpu.memory_space<vmem>>, vector<1x16xf32>
    %17 = vector.shape_cast %16 : vector<1x16xf32> to vector<1x1x16xf32>
    %18 = vector.broadcast %17 : vector<1x1x16xf32> to vector<8x8x16xf32>
    %19 = arith.addf %15, %18 : vector<8x8x16xf32>
    %cst_27 = arith.constant 0.000000e+00 : f32
    %20 = vector.broadcast %cst_27 : f32 to vector<8x8x16xf32>
    %21 = arith.maximumf %19, %20 : vector<8x8x16xf32>
    %c1 = arith.constant 1 : index
    %c1_28 = arith.constant 1 : index
    %c0_29 = arith.constant 0 : index
    %22 = vector.load %arg10[%c1, %c1_28, %c0_29] : memref<9x9x16xf32, #tpu.memory_space<vmem>>, vector<8x8x16xf32>
    tpu.vector_store %arg10[%c1, %c1_28, %c0_29], %21 {strides = array<i32>} : memref<9x9x16xf32, #tpu.memory_space<vmem>>, vector<8x8x16xf32>,
    %23 = vector.extract_strided_slice %21 {offsets = [0, 0, 0], sizes = [8, 8, 4], strides = [1, 1, 1]} : vector<8x8x16xf32> to vector<8x8x4xf32>
    %24 = vector.shape_cast %23 : vector<8x8x4xf32> to vector<64x4xf32>
    %c0_30 = arith.constant 0 : index
    %c0_31 = arith.constant 0 : index
    %25 = vector.load %arg8[%c0_30, %c0_31] : memref<4x128xf32, #tpu.memory_space<vmem>>, vector<4x128xf32>
    %cst_32 = arith.constant dense<0.000000e+00> : vector<64x128xf32>
    %26 = tpu.matmul %24, %25, %cst_32 {dimension_numbers = #tpu.dot_dimension_numbers<[1], [0], [0], [1], [0, 0, 1, 1], [], []>} : vector<64x4xf32>, vector<4x128xf32>, vector<64x128xf32> -> vector<64x128xf32>
    %cst_33 = arith.constant 0.000000e+00 : f32
    %27 = vector.broadcast %cst_33 : f32 to vector<64x128xf32>
    %c0_34 = arith.constant 0 : index
    %c0_35 = arith.constant 0 : index
    %c0_36 = arith.constant 0 : index
    %28 = vector.load %arg10[%c0_34, %c0_35, %c0_36] : memref<9x9x16xf32, #tpu.memory_space<vmem>>, vector<8x8x16xf32>
    %29 = vector.shape_cast %28 : vector<8x8x16xf32> to vector<64x16xf32>
    %c0_37 = arith.constant 0 : index
    %c0_38 = arith.constant 0 : index
    %30 = vector.load %arg4[%c0_37, %c0_38] : memref<64x128xf32, #tpu.memory_space<vmem>>, vector<16x128xf32>
    %cst_39 = arith.constant dense<0.000000e+00> : vector<64x128xf32>
    %31 = tpu.matmul %29, %30, %cst_39 {dimension_numbers = #tpu.dot_dimension_numbers<[1], [0], [0], [1], [0, 0, 1, 1], [], []>} : vector<64x16xf32>, vector<16x128xf32>, vector<64x128xf32> -> vector<64x128xf32>
    %32 = arith.addf %27, %31 : vector<64x128xf32>
    %c0_40 = arith.constant 0 : index
    %c1_41 = arith.constant 1 : index
    %c0_42 = arith.constant 0 : index
    %33 = vector.load %arg10[%c0_40, %c1_41, %c0_42] : memref<9x9x16xf32, #tpu.memory_space<vmem>>, vector<8x8x16xf32>
    %34 = vector.shape_cast %33 : vector<8x8x16xf32> to vector<64x16xf32>
    %c16 = arith.constant 16 : index
    %c0_43 = arith.constant 0 : index
    %35 = vector.load %arg4[%c16, %c0_43] : memref<64x128xf32, #tpu.memory_space<vmem>>, vector<16x128xf32>
    %cst_44 = arith.constant dense<0.000000e+00> : vector<64x128xf32>
    %36 = tpu.matmul %34, %35, %cst_44 {dimension_numbers = #tpu.dot_dimension_numbers<[1], [0], [0], [1], [0, 0, 1, 1], [], []>} : vector<64x16xf32>, vector<16x128xf32>, vector<64x128xf32> -> vector<64x128xf32>
    %37 = arith.addf %32, %36 : vector<64x128xf32>
    %c1_45 = arith.constant 1 : index
    %c0_46 = arith.constant 0 : index
    %c0_47 = arith.constant 0 : index
    %38 = vector.load %arg10[%c1_45, %c0_46, %c0_47] : memref<9x9x16xf32, #tpu.memory_space<vmem>>, vector<8x8x16xf32>
    %39 = vector.shape_cast %38 : vector<8x8x16xf32> to vector<64x16xf32>
    %c32 = arith.constant 32 : index
    %c0_48 = arith.constant 0 : index
    %40 = vector.load %arg4[%c32, %c0_48] : memref<64x128xf32, #tpu.memory_space<vmem>>, vector<16x128xf32>
    %cst_49 = arith.constant dense<0.000000e+00> : vector<64x128xf32>
    %41 = tpu.matmul %39, %40, %cst_49 {dimension_numbers = #tpu.dot_dimension_numbers<[1], [0], [0], [1], [0, 0, 1, 1], [], []>} : vector<64x16xf32>, vector<16x128xf32>, vector<64x128xf32> -> vector<64x128xf32>
    %42 = arith.addf %37, %41 : vector<64x128xf32>
    %c1_50 = arith.constant 1 : index
    %c1_51 = arith.constant 1 : index
    %c0_52 = arith.constant 0 : index
    %43 = vector.load %arg10[%c1_50, %c1_51, %c0_52] : memref<9x9x16xf32, #tpu.memory_space<vmem>>, vector<8x8x16xf32>
    %44 = vector.shape_cast %43 : vector<8x8x16xf32> to vector<64x16xf32>
    %c48 = arith.constant 48 : index
    %c0_53 = arith.constant 0 : index
    %45 = vector.load %arg4[%c48, %c0_53] : memref<64x128xf32, #tpu.memory_space<vmem>>, vector<16x128xf32>
    %cst_54 = arith.constant dense<0.000000e+00> : vector<64x128xf32>
    %46 = tpu.matmul %44, %45, %cst_54 {dimension_numbers = #tpu.dot_dimension_numbers<[1], [0], [0], [1], [0, 0, 1, 1], [], []>} : vector<64x16xf32>, vector<16x128xf32>, vector<64x128xf32> -> vector<64x128xf32>
    %47 = arith.addf %42, %46 : vector<64x128xf32>
    %c0_55 = arith.constant 0 : index
    %c0_56 = arith.constant 0 : index
    %48 = vector.load %arg5[%c0_55, %c0_56] : memref<1x128xf32, #tpu.memory_space<vmem>>, vector<1x128xf32>
    %49 = vector.broadcast %48 : vector<1x128xf32> to vector<64x128xf32>
    %50 = arith.mulf %47, %49 : vector<64x128xf32>
    %c0_57 = arith.constant 0 : index
    %c0_58 = arith.constant 0 : index
    %51 = vector.load %arg6[%c0_57, %c0_58] : memref<1x128xf32, #tpu.memory_space<vmem>>, vector<1x128xf32>
    %52 = vector.broadcast %51 : vector<1x128xf32> to vector<64x128xf32>
    %53 = arith.addf %50, %52 : vector<64x128xf32>
    %cst_59 = arith.constant 0.000000e+00 : f32
    %54 = vector.broadcast %cst_59 : f32 to vector<64x128xf32>
    %55 = arith.maximumf %53, %54 : vector<64x128xf32>
    %56 = vector.shape_cast %55 : vector<64x128xf32> to vector<8x8x128xf32>
    %c1_60 = arith.constant 1 : index
    %c1_61 = arith.constant 1 : index
    %c0_62 = arith.constant 0 : index
    %57 = vector.load %arg11[%c1_60, %c1_61, %c0_62] : memref<10x10x128xf32, #tpu.memory_space<vmem>>, vector<8x8x128xf32>
    tpu.vector_store %arg11[%c1_60, %c1_61, %c0_62], %56 {strides = array<i32>} : memref<10x10x128xf32, #tpu.memory_space<vmem>>, vector<8x8x128xf32>,
    %c0_63 = arith.constant 0 : index
    %c0_64 = arith.constant 0 : index
    %c0_65 = arith.constant 0 : index
    %58 = vector.load %arg11[%c0_63, %c0_64, %c0_65] : memref<10x10x128xf32, #tpu.memory_space<vmem>>, vector<8x8x128xf32>
    %59 = vector.shape_cast %58 : vector<8x8x128xf32> to vector<64x128xf32>
    %c0_66 = arith.constant 0 : index
    %c1_67 = arith.constant 1 : index
    %c0_68 = arith.constant 0 : index
    %60 = vector.load %arg11[%c0_66, %c1_67, %c0_68] : memref<10x10x128xf32, #tpu.memory_space<vmem>>, vector<8x8x128xf32>
    %61 = vector.shape_cast %60 : vector<8x8x128xf32> to vector<64x128xf32>
    %c0_69 = arith.constant 0 : index
    %c2 = arith.constant 2 : index
    %c0_70 = arith.constant 0 : index
    %62 = vector.load %arg11[%c0_69, %c2, %c0_70] : memref<10x10x128xf32, #tpu.memory_space<vmem>>, vector<8x8x128xf32>
    %63 = vector.shape_cast %62 : vector<8x8x128xf32> to vector<64x128xf32>
    %c1_71 = arith.constant 1 : index
    %c0_72 = arith.constant 0 : index
    %c0_73 = arith.constant 0 : index
    %64 = vector.load %arg11[%c1_71, %c0_72, %c0_73] : memref<10x10x128xf32, #tpu.memory_space<vmem>>, vector<8x8x128xf32>
    %65 = vector.shape_cast %64 : vector<8x8x128xf32> to vector<64x128xf32>
    %c1_74 = arith.constant 1 : index
    %c1_75 = arith.constant 1 : index
    %c0_76 = arith.constant 0 : index
    %66 = vector.load %arg11[%c1_74, %c1_75, %c0_76] : memref<10x10x128xf32, #tpu.memory_space<vmem>>, vector<8x8x128xf32>
    %67 = vector.shape_cast %66 : vector<8x8x128xf32> to vector<64x128xf32>
    %c1_77 = arith.constant 1 : index
    %c2_78 = arith.constant 2 : index
    %c0_79 = arith.constant 0 : index
    %68 = vector.load %arg11[%c1_77, %c2_78, %c0_79] : memref<10x10x128xf32, #tpu.memory_space<vmem>>, vector<8x8x128xf32>
    %69 = vector.shape_cast %68 : vector<8x8x128xf32> to vector<64x128xf32>
    %c2_80 = arith.constant 2 : index
    %c0_81 = arith.constant 0 : index
    %c0_82 = arith.constant 0 : index
    %70 = vector.load %arg11[%c2_80, %c0_81, %c0_82] : memref<10x10x128xf32, #tpu.memory_space<vmem>>, vector<8x8x128xf32>
    %71 = vector.shape_cast %70 : vector<8x8x128xf32> to vector<64x128xf32>
    %c2_83 = arith.constant 2 : index
    %c1_84 = arith.constant 1 : index
    %c0_85 = arith.constant 0 : index
    %72 = vector.load %arg11[%c2_83, %c1_84, %c0_85] : memref<10x10x128xf32, #tpu.memory_space<vmem>>, vector<8x8x128xf32>
    %73 = vector.shape_cast %72 : vector<8x8x128xf32> to vector<64x128xf32>
    %c2_86 = arith.constant 2 : index
    %c2_87 = arith.constant 2 : index
    %c0_88 = arith.constant 0 : index
    %74 = vector.load %arg11[%c2_86, %c2_87, %c0_88] : memref<10x10x128xf32, #tpu.memory_space<vmem>>, vector<8x8x128xf32>
    %75 = vector.shape_cast %74 : vector<8x8x128xf32> to vector<64x128xf32>
    %76 = tpu.concatenate %59, %61, %63, %65, %67, %69, %71, %73, %75 in 1 : vector<64x128xf32>, vector<64x128xf32>, vector<64x128xf32>, vector<64x128xf32>, vector<64x128xf32>, vector<64x128xf32>, vector<64x128xf32>, vector<64x128xf32>, vector<64x128xf32> -> vector<64x1152xf32>
    %c0_89 = arith.constant 0 : index
    %c0_90 = arith.constant 0 : index
    %77 = vector.load %arg7[%c0_89, %c0_90] : memref<1152x128xf32, #tpu.memory_space<vmem>>, vector<1152x128xf32>
    %cst_91 = arith.constant dense<0.000000e+00> : vector<64x128xf32>
    %78 = tpu.matmul %76, %77, %cst_91 {dimension_numbers = #tpu.dot_dimension_numbers<[1], [0], [0], [1], [0, 0, 1, 1], [], []>} : vector<64x1152xf32>, vector<1152x128xf32>, vector<64x128xf32> -> vector<64x128xf32>
    %79 = arith.addf %26, %78 : vector<64x128xf32>
    %80 = vector.shape_cast %79 : vector<64x128xf32> to vector<1x8x8x128xf32>
    %c0_92 = arith.constant 0 : index
    %c0_93 = arith.constant 0 : index
    %c0_94 = arith.constant 0 : index
    %c0_95 = arith.constant 0 : index
    %81 = vector.load %arg9[%c0_92, %c0_93, %c0_94, %c0_95] : memref<1x8x8x128xf32, #tpu.memory_space<vmem>>, vector<1x8x8x128xf32>
    tpu.vector_store %arg9[%c0_92, %c0_93, %c0_94, %c0_95], %80 {strides = array<i32>} : memref<1x8x8x128xf32, #tpu.memory_space<vmem>>, vector<1x8x8x128xf32>,
    return
  }
  func.func @transform_0(%arg0: i32) -> (i32, i32, i32, i32) {
    %c0_i32 = arith.constant 0 : i32
    %c0_i32_0 = arith.constant 0 : i32
    %c0_i32_1 = arith.constant 0 : i32
    %c0_i32_2 = arith.constant 0 : i32
    return %arg0, %c0_i32, %c0_i32_0, %c0_i32_1 : i32, i32, i32, i32
  }
  func.func @transform_1(%arg0: i32) -> (i32, i32) {
    %c0_i32 = arith.constant 0 : i32
    %c0_i32_0 = arith.constant 0 : i32
    %c0_i32_1 = arith.constant 0 : i32
    return %c0_i32, %c0_i32_0 : i32, i32
  }
  func.func @transform_2(%arg0: i32) -> (i32, i32) {
    %c0_i32 = arith.constant 0 : i32
    %c0_i32_0 = arith.constant 0 : i32
    %c0_i32_1 = arith.constant 0 : i32
    return %c0_i32, %c0_i32_0 : i32, i32
  }
  func.func @transform_3(%arg0: i32) -> (i32, i32) {
    %c0_i32 = arith.constant 0 : i32
    %c0_i32_0 = arith.constant 0 : i32
    %c0_i32_1 = arith.constant 0 : i32
    return %c0_i32, %c0_i32_0 : i32, i32
  }
  func.func @transform_4(%arg0: i32) -> (i32, i32) {
    %c0_i32 = arith.constant 0 : i32
    %c0_i32_0 = arith.constant 0 : i32
    %c0_i32_1 = arith.constant 0 : i32
    return %c0_i32, %c0_i32_0 : i32, i32
  }
  func.func @transform_5(%arg0: i32) -> (i32, i32) {
    %c0_i32 = arith.constant 0 : i32
    %c0_i32_0 = arith.constant 0 : i32
    %c0_i32_1 = arith.constant 0 : i32
    return %c0_i32, %c0_i32_0 : i32, i32
  }
  func.func @transform_6(%arg0: i32) -> (i32, i32) {
    %c0_i32 = arith.constant 0 : i32
    %c0_i32_0 = arith.constant 0 : i32
    %c0_i32_1 = arith.constant 0 : i32
    return %c0_i32, %c0_i32_0 : i32, i32
  }
  func.func @transform_7(%arg0: i32) -> (i32, i32) {
    %c0_i32 = arith.constant 0 : i32
    %c0_i32_0 = arith.constant 0 : i32
    %c0_i32_1 = arith.constant 0 : i32
    return %c0_i32, %c0_i32_0 : i32, i32
  }
  func.func @transform_8(%arg0: i32) -> (i32, i32, i32, i32) {
    %c0_i32 = arith.constant 0 : i32
    %c0_i32_0 = arith.constant 0 : i32
    %c0_i32_1 = arith.constant 0 : i32
    %c0_i32_2 = arith.constant 0 : i32
    return %arg0, %c0_i32, %c0_i32_0, %c0_i32_1 : i32, i32, i32, i32
  }
}

</mosaic_0001>

<bundles_post_ra>
// kernel: tile.13
= control target key start
LH: loop header
LB: loop body
LE: loop exit
PB: predicated region body
PF: predicated region fallthrough
CT: control target
= control target key end

     0   :  { %s22_s0 = inlined_call_operand.vmem [shape: f32[4], index: 0, kind: input, shape index: {}]   ;;  %s23_s1 = inlined_call_operand.vmem [shape: f32[4,4], index: 1, kind: output, shape index: {}]  }
   0x1   :  { %v4_v0 = vld [vmem:[%s22_s0] ss:$0 sm:$0xff] }
   0x2   :  { %5 = vst [vmem:[%s23_s1] sm:$0xf] %v4_v0 }

// kernel: tile.14
= control target key start
LH: loop header
LB: loop body
LE: loop exit
PB: predicated region body
PF: predicated region fallthrough
CT: control target
= control target key end

     0   :  { %s101_s0 = inlined_call_operand.vmem [shape: f32[4,4], index: 0, kind: input, shape index: {}]   ;;  %s102_s1 = inlined_call_operand.hbm [shape: f32[1,16], index: 1, kind: output, shape index: {}]  }
   0x1   :  { %v5_v0 = vld [vmem:[%s101_s0] sm:$0xf] }
   0x2   :  { %6 = vst [vmem:[#allocation3] sm:$0xf] %v5_v0 }
   0x3   :  { %2 = vsyncpa [#allocation1], 0  ;;  %vm8_vm0 = vcmask 31744   ;;  %s72_s0 = smov 12   ;;  %s73_s8 = smov 4   ;;  %vm14_vm1 = vcmask 130144  }
   0x4   :  { %s74_s9 = smov 8   ;;  %vm20_vm2 = vcmask 97344   ;;  %vm26_vm3 = vcmask 64544   ;;  %s75_s10 = smov [#allocation0]  }
   0x5   :  { %s38_s11 = sshll.u32 %s75_s10, 4  ;;  %s39_s11 = int_to_ptr.vmem [resolvable:$true] %s38_s11 }
   0x6   :  { %s48_s12 = scalar_lea.vmem %s39_s11, 16  ;;  %s52_s13 = scalar_lea.vmem %s39_s11, 32 }
   0x7   :  { %p49_p0 = scmp.ne.s32.totalorder %s39_s11, %s48_s12  ;;  %p53_p1 = scmp.lt.s32.totalorder %s39_s11, %s39_s11 }
   0x8   :  { %p54_p2 = scmp.lt.s32.totalorder %s52_s13, %s48_s12 }
   0x9   :  { %v11_v1 = vld [vmem:[#allocation3 + $0x3] sm:$0x1]   ;;  %v23_v2 = vld [vmem:[#allocation3 + $0x1] sm:$0x1]   ;;  %v7_v3 = vld [vmem:[#allocation3] sm:$0x1]  }
   0xa   :  { %12 = vrot.lane.b32.xlu0 %v11_v1, %s72_s0  ;;  %24 = vrot.lane.b32.xlu1 %v23_v2, %s73_s8  ;;  %v17_v4 = vld [vmem:[#allocation3 + $0x2] sm:$0x1]   ;;  %9 = vst.msk [vmem:[#allocation2] sm:$0x1] %vm8_vm0, %v7_v3   ;;  %p55_p3 = por %p54_p2, %p53_p1 }
   0xc   :  { %p56_p4 = pnand %p55_p3, %p49_p0 }
   0xe   :  { %18 = vrot.lane.b32.xlu0 %v17_v4, %s74_s9 }
  0x7c   :  { %v13_v5 = vpop.permute.xlu0 %12   ;;  %v25_v6 = vpop.permute.xlu1 %24  }
  0x7d   :  { %15 = vst.msk [vmem:[#allocation2] sm:$0x1] %vm14_vm1, %v13_v5  }
  0x80   :  { %v19_v7 = vpop.permute.xlu0 %18  }
  0x81   :  { %21 = vst.msk [vmem:[#allocation2] sm:$0x1] %vm20_vm2, %v19_v7  }
  0x82   :  { %27 = vst.msk [vmem:[#allocation2] sm:$0x1] %vm26_vm3, %v25_v6  }
  0x89   :  { %v31_v8 = vld [vmem:[#allocation2] sm:$0x1] }
  0x8a   :  { %33 = vst [vmem:[#allocation0] sm:$0x1] %v31_v8 }
  0x8b   :  { %59 = shalt.err (!%p56_p4)
}
  0x8c   :  { %s60_s16 = scalar_lea.hbm %s102_s1, 16 }
  0x8d   :  { %p61_p5 = scmp.ne.s32.totalorder %s102_s1, %s60_s16  ;;  %p64_p6 = scmp.lt.u32.totalorder %s60_s16, %s102_s1 }
  0x8f   :  { %p66_p7 = pnand %p64_p6, %p61_p5 }
  0x91   :  { %69 = shalt.err (!%p66_p7)
}
  0x92   :  { %41 = dma.vmem_to_hbm [thread:$0]  %s39_s11, 16, %s102_s1, [#allocation1]  }
  0x93   :  { %70 = dma.done.wait [#allocation1], 16  }
  0x94   :  { %71 = vsyncadd [#allocation1], 4294967280 }
  0x95   :  { %43 = vsyncpa [#allocation1], 1 }

// kernel: downsample_unit_forward.1
= control target key start
LH: loop header
LB: loop body
LE: loop exit
PB: predicated region body
PF: predicated region fallthrough
CT: control target
= control target key end

     0   :  { %s4003_s0 = inlined_call_operand.hbm [shape: f32[2,8,8,16], index: 0, kind: input, shape index: {}]   ;;  %s4004_s1 = inlined_call_operand.hbm [shape: f32[1,16], index: 1, kind: input, shape index: {}]   ;;  %s4005_s2 = inlined_call_operand.hbm [shape: f32[1,16], index: 2, kind: input, shape index: {}]   ;;  %s4006_s3 = inlined_call_operand.hbm [shape: f32[64,128], index: 3, kind: input, shape index: {}]   ;;  %s4007_s4 = inlined_call_operand.hbm [shape: f32[1,128], index: 4, kind: input, shape index: {}]   ;;  %s4008_s5 = inlined_call_operand.hbm [shape: f32[1,128], index: 5, kind: input, shape index: {}]   ;;  %s4009_s6 = inlined_call_operand.hbm [shape: f32[1152,128], index: 6, kind: input, shape index: {}]   ;;  %s4010_s7 = inlined_call_operand.hbm [shape: f32[4,128], index: 7, kind: input, shape index: {}]   ;;  %s4011_s8 = inlined_call_operand.hbm [shape: f32[2,8,8,128], index: 8, kind: output, shape index: {}]  }
   0x1   :  { %4018 = sst [smem:[#allocation25_spill]] %s4004_s1 }
   0x2   :  { %13 = vsyncpa [#allocation5], 0 }
   0x3   :  { %15 = vsyncpa [#allocation5 + $0x1], 0 }
   0x4   :  { %16 = vsyncpa [#allocation8], 0 }
   0x5   :  { %17 = vsyncpa [#allocation11], 0 }
   0x6   :  { %18 = vsyncpa [#allocation14], 0 }
   0x7   :  { %19 = vsyncpa [#allocation17], 0 }
   0x8   :  { %20 = vsyncpa [#allocation6], 0 }
   0x9   :  { %22 = vsyncpa [#allocation6 + $0x1], 0  ;;  %s3368_s27 = smov 0   ;;  %s3370_s28 = smov 0  }
   0xa   :  { %s3372_s29 = smov 0   ;;  %s3374_s30 = smov 0  }
   0xb LB: > { %s3309_s9 = smov [#allocation7]   ;;  %s3389_s11 = sadd.s32 4294967295, %s3307_s30   ;;  %s3307_s30 = sphi %s3374_s30, %s4045_s30   ;;  %s3303_s29 = sphi %s3372_s29, %s4044_s29   ;;  %s3299_s28 = sphi %s3370_s28, %s4043_s28   ;;  %s3295_s27 = sphi %s3368_s27, %s4042_s27  }
   0xc   : > { %s245_s10 = sshll.u32 %s3309_s9, 4  ;;  %p2168_p0 = scmp.ge.s32.totalorder %s3307_s30, 1  ;;  %s3394_s10 = int_to_ptr.vmem [resolvable:$true] %s245_s10 }
   0xd   : > { %p4014_p1 = scmp.eq.s32.totalorder %s3389_s11, 0  ;;  %p232_p2 = scmp.lt.s32.totalorder %s3307_s30, 3 }
   0xe   : > { %s3310_s13 = smov [#allocation10]   ;;  %s3311_s16 = smov [#allocation13]  }
   0xf   : > { %p3396_p3 = pnand %p2168_p0, %p232_p2  ;;  %s266_s14 = sshll.u32 %s3310_s13, 4  ;;  %s3403_s14 = int_to_ptr.vmem [resolvable:$true] %s266_s14 }
  0x10   : > { %s291_s17 = sshll.u32 %s3311_s16, 4  ;;  %s4021_s1 = sld [smem:[#allocation25_spill]]  ;;  %s3411_s17 = int_to_ptr.vmem [resolvable:$true] %s291_s17 }
  0x11   : > { %s4019_s12 = scalar_select %p3396_p3, 1, 0 }
  0x12   : > { %p2909_p5 = pneg %p3396_p3 }
  0x14   : > { %p3407_p6 = pnand %p2909_p5, %p4014_p1 }
  0x16   : > { %s2999_s20 = scalar_lea.hbm %s4021_s1, 16  ;;  %p3421_p8 = pneg %p3407_p6 }
  0x17   : > { %p3000_p7 = scmp.ne.s32.totalorder %s4021_s1, %s2999_s20  ;;  %p3006_p11 = scmp.lt.u32.totalorder %s2999_s20, %s4021_s1 }
  0x19   : > { %p3002_p9 = pnand %p3421_p8, %p3000_p7 }
  0x1b   : > { %p3003_p10 = pneg %p3002_p9 }
  0x1d   : > { %p3008_p12 = pnand %p3006_p11, %p3003_p10 }
  0x1f   : > { %3011 = shalt.err (!%p3008_p12)
}
  0x20   : > { %s3012_s26 = scalar_lea.vmem %s3394_s10, 16  ;;  %s3019_s9 = scalar_lea.vmem %s3394_s10, 32 }
  0x21   : > { %p3013_p13 = scmp.ne.s32.totalorder %s3394_s10, %s3012_s26  ;;  %p3020_p5 = scmp.lt.s32.totalorder %s3394_s10, %s3394_s10 }
  0x22   : > { %p3021_p7 = scmp.lt.s32.totalorder %s3019_s9, %s3012_s26 }
  0x23   : > { %p3015_p0 = pnand %p3013_p13, %p3421_p8 }
  0x24   : > { %p3022_p9 = por %p3021_p7, %p3020_p5 }
  0x25   : > { %p3016_p2 = pneg %p3015_p0 }
  0x27   : > { %p3023_p4 = pnand %p3022_p9, %p3016_p2 }
  0x29   : > { %3026 = shalt.err (!%p3023_p4)
}
  0x2a   : > { %2912 = dma.hbm_to_vmem [thread:$0]  (!%p3407_p6), %s4021_s1, 16, %s3394_s10, [#allocation8]  }
  0x2b   : > { %s3027_s20 = scalar_lea.hbm %s4006_s3, 1024 }
  0x2c   : > { %p3028_p10 = scmp.ne.s32.totalorder %s4006_s3, %s3027_s20  ;;  %p3034_p4 = scmp.lt.u32.totalorder %s3027_s20, %s4006_s3 }
  0x2e   : > { %p3030_p11 = pnand %p3028_p10, %p3421_p8 }
  0x30   : > { %p3031_p12 = pneg %p3030_p11 }
  0x32   : > { %p3036_p13 = pnand %p3034_p4, %p3031_p12 }
  0x34   : > { %3039 = shalt.err (!%p3036_p13)
}
  0x35   : > { %s3040_s10 = scalar_lea.vmem %s3403_s14, 1024  ;;  %p3048_p7 = scmp.lt.s32.totalorder %s3403_s14, %s3403_s14 }
  0x36   : > { %p3041_p0 = scmp.ne.s32.totalorder %s3403_s14, %s3040_s10  ;;  %p3049_p9 = scmp.lt.s32.totalorder %s3040_s10, %s3040_s10 }
  0x38   : > { %p3043_p2 = pnand %p3041_p0, %p3421_p8  ;;  %p3050_p10 = por %p3049_p9, %p3048_p7 }
  0x3a   : > { %p3044_p5 = pneg %p3043_p2 }
  0x3c   : > { %p3051_p11 = pnand %p3050_p10, %p3044_p5 }
  0x3e   : > { %3054 = shalt.err (!%p3051_p11)
}
  0x3f   : > { %s4012_s26 = smov 128   ;;  %s4016_s9 = smov 8  }
  0x40   : > { %2918 = dma.hbm_to_vmem [thread:$0]  (!%p3407_p6), %s4006_s3, 1024, %s3403_s14, [#allocation11], %s4012_s26, %s4012_s26, %s4016_s9  }
  0x41   : > { %s3055_s20 = scalar_lea.hbm %s4008_s5, 16 }
  0x42   : > { %p3056_p12 = scmp.ne.s32.totalorder %s4008_s5, %s3055_s20  ;;  %p3062_p0 = scmp.lt.u32.totalorder %s3055_s20, %s4008_s5 }
  0x44   : > { %p3058_p4 = pnand %p3056_p12, %p3421_p8 }
  0x46   : > { %p3059_p13 = pneg %p3058_p4 }
  0x48   : > { %p3064_p2 = pnand %p3062_p0, %p3059_p13 }
  0x4a   : > { %3067 = shalt.err (!%p3064_p2)
}
  0x4b   : > { %s3068_s14 = scalar_lea.vmem %s3411_s17, 16  ;;  %s3075_s10 = scalar_lea.vmem %s3411_s17, 32 }
  0x4c   : > { %p3069_p5 = scmp.ne.s32.totalorder %s3411_s17, %s3068_s14  ;;  %p3076_p10 = scmp.lt.s32.totalorder %s3411_s17, %s3411_s17 }
  0x4d   : > { %p3077_p11 = scmp.lt.s32.totalorder %s3075_s10, %s3068_s14 }
  0x4e   : > { %p3071_p7 = pnand %p3069_p5, %p3421_p8 }
  0x4f   : > { %p3078_p12 = por %p3077_p11, %p3076_p10 }
  0x50   : > { %p3072_p9 = pneg %p3071_p7 }
  0x52   : > { %p3079_p4 = pnand %p3078_p12, %p3072_p9 }
  0x54   : > { %3082 = shalt.err (!%p3079_p4)
}
  0x55   : > { %2924 = dma.hbm_to_vmem [thread:$0]  (!%p3407_p6), %s4008_s5, 16, %s3411_s17, [#allocation14]  }
  0x56   : > { %s3314_s18 = smov [#allocation9]   ;;  %s3315_s20 = smov [#allocation12]  }
  0x57   : > { %s256_s19 = sshll.u32 %s3314_s18, 4  ;;  %s280_s21 = sshll.u32 %s3315_s20, 4  ;;  %s257_s19 = int_to_ptr.vmem [resolvable:$true] %s256_s19  ;;  %s281_s21 = int_to_ptr.vmem [resolvable:$true] %s280_s21 }
  0x58   : > { %s3083_s25 = scalar_lea.hbm %s4005_s2, 16 }
  0x59   : > { %p3084_p13 = scmp.ne.s32.totalorder %s4005_s2, %s3083_s25  ;;  %p3090_p5 = scmp.lt.u32.totalorder %s3083_s25, %s4005_s2 }
  0x5b   : > { %p3086_p0 = pnand %p3084_p13, %p3421_p8 }
  0x5d   : > { %p3087_p2 = pneg %p3086_p0 }
  0x5f   : > { %p3092_p7 = pnand %p3090_p5, %p3087_p2 }
  0x61   : > { %3095 = shalt.err (!%p3092_p7)
}
  0x62   : > { %s3096_s17 = scalar_lea.vmem %s257_s19, 16  ;;  %s3103_s16 = scalar_lea.vmem %s257_s19, 32 }
  0x63   : > { %p3097_p9 = scmp.ne.s32.totalorder %s257_s19, %s3096_s17  ;;  %p3104_p12 = scmp.lt.s32.totalorder %s257_s19, %s257_s19 }
  0x64   : > { %p3105_p4 = scmp.lt.s32.totalorder %s3103_s16, %s3096_s17 }
  0x65   : > { %p3099_p10 = pnand %p3097_p9, %p3421_p8 }
  0x66   : > { %p3106_p1 = por %p3105_p4, %p3104_p12 }
  0x67   : > { %p3100_p11 = pneg %p3099_p10 }
  0x69   : > { %p3107_p3 = pnand %p3106_p1, %p3100_p11 }
  0x6b   : > { %3110 = shalt.err (!%p3107_p3)
}
  0x6c   : > { %2915 = dma.hbm_to_vmem [thread:$0]  (!%p3407_p6), %s4005_s2, 16, %s257_s19, [#allocation8]  }
  0x6d   : > { %s3111_s24 = scalar_lea.hbm %s4007_s4, 16 }
  0x6e   : > { %p3112_p13 = scmp.ne.s32.totalorder %s4007_s4, %s3111_s24  ;;  %p3118_p3 = scmp.lt.u32.totalorder %s3111_s24, %s4007_s4 }
  0x70   : > { %p3114_p0 = pnand %p3112_p13, %p3421_p8 }
  0x72   : > { %p3115_p1 = pneg %p3114_p0 }
  0x74   : > { %p3120_p2 = pnand %p3118_p3, %p3115_p1 }
  0x76   : > { %3123 = shalt.err (!%p3120_p2)
}
  0x77   : > { %s3124_s17 = scalar_lea.vmem %s281_s21, 16  ;;  %s3131_s19 = scalar_lea.vmem %s281_s21, 32 }
  0x78   : > { %p3125_p5 = scmp.ne.s32.totalorder %s281_s21, %s3124_s17  ;;  %p3132_p10 = scmp.lt.s32.totalorder %s281_s21, %s281_s21 }
  0x79   : > { %p3133_p11 = scmp.lt.s32.totalorder %s3131_s19, %s3124_s17 }
  0x7a   : > { %p3127_p7 = pnand %p3125_p5, %p3421_p8 }
  0x7b   : > { %p3134_p12 = por %p3133_p11, %p3132_p10 }
  0x7c   : > { %p3128_p9 = pneg %p3127_p7 }
  0x7e   : > { %p3135_p4 = pnand %p3134_p12, %p3128_p9 }
  0x80   : > { %3138 = shalt.err (!%p3135_p4)
}
  0x81   : > { %2921 = dma.hbm_to_vmem [thread:$0]  (!%p3407_p6), %s4007_s4, 16, %s281_s21, [#allocation11]  }
  0x82   : > { %s3316_s20 = smov [#allocation15]   ;;  %s3317_s22 = smov [#allocation16]  }
  0x83   : > { %s301_s26 = sshll.u32 %s3316_s20, 4  ;;  %s315_s24 = sshll.u32 %s3317_s22, 4  ;;  %s302_s26 = int_to_ptr.vmem [resolvable:$true] %s301_s26  ;;  %s316_s24 = int_to_ptr.vmem [resolvable:$true] %s315_s24 }
  0x84   : > { %s3139_s10 = scalar_lea.hbm %s4009_s6, 18432 }
  0x85   : > { %p3140_p13 = scmp.ne.s32.totalorder %s4009_s6, %s3139_s10  ;;  %p3146_p3 = scmp.lt.u32.totalorder %s3139_s10, %s4009_s6 }
  0x87   : > { %p3142_p0 = pnand %p3140_p13, %p3421_p8 }
  0x89   : > { %p3143_p1 = pneg %p3142_p0 }
  0x8b   : > { %p3148_p2 = pnand %p3146_p3, %p3143_p1 }
  0x8d   : > { %3151 = shalt.err (!%p3148_p2)
}
  0x8e   : > { %s3152_s21 = scalar_lea.vmem %s302_s26, 18432  ;;  %p3160_p10 = scmp.lt.s32.totalorder %s302_s26, %s302_s26 }
  0x8f   : > { %p3153_p5 = scmp.ne.s32.totalorder %s302_s26, %s3152_s21  ;;  %p3161_p11 = scmp.lt.s32.totalorder %s3152_s21, %s3152_s21 }
  0x91   : > { %p3155_p7 = pnand %p3153_p5, %p3421_p8  ;;  %p3162_p12 = por %p3161_p11, %p3160_p10 }
  0x93   : > { %p3156_p9 = pneg %p3155_p7 }
  0x95   : > { %p3163_p4 = pnand %p3162_p12, %p3156_p9 }
  0x97   : > { %3166 = shalt.err (!%p3163_p4)
}
  0x98   : > { %s4023_s18 = smov 128   ;;  %s3167_s10 = scalar_lea.hbm %s4010_s7, 64 }
  0x99   : > { %2927 = dma.hbm_to_vmem [thread:$0]  (!%p3407_p6), %s4009_s6, 18432, %s302_s26, [#allocation14], %s4023_s18, %s4023_s18, %s4016_s9  }
  0x9a   : > { %p3168_p13 = scmp.ne.s32.totalorder %s4010_s7, %s3167_s10  ;;  %p3174_p3 = scmp.lt.u32.totalorder %s3167_s10, %s4010_s7 }
  0x9c   : > { %p3170_p0 = pnand %p3168_p13, %p3421_p8 }
  0x9e   : > { %p3171_p1 = pneg %p3170_p0 }
  0xa0   : > { %p3176_p2 = pnand %p3174_p3, %p3171_p1 }
  0xa2   : > { %3179 = shalt.err (!%p3176_p2)
}
  0xa3   : > { %s3180_s21 = scalar_lea.vmem %s316_s24, 64  ;;  %p3188_p10 = scmp.lt.s32.totalorder %s316_s24, %s316_s24 }
  0xa4   : > { %p3181_p5 = scmp.ne.s32.totalorder %s316_s24, %s3180_s21  ;;  %p3189_p11 = scmp.lt.s32.totalorder %s3180_s21, %s3180_s21 }
  0xa6   : > { %p3183_p7 = pnand %p3181_p5, %p3421_p8  ;;  %p3190_p12 = por %p3189_p11, %p3188_p10 }
  0xa8   : > { %p3184_p9 = pneg %p3183_p7 }
  0xaa   : > { %p3191_p4 = pnand %p3190_p12, %p3184_p9 }
  0xac   : > { %3194 = shalt.err (!%p3191_p4)
}
  0xad   : > { %2930 = dma.hbm_to_vmem [thread:$0]  (!%p3407_p6), %s4010_s7, 64, %s316_s24, [#allocation17]  }
  0xae   : > { %s2167_s23 = sadd.s32 4294967294, %s3307_s30   ;;  %s3570_s15 = sadd.s32 1, %s3307_s30  }
  0xaf   : > { %s35_s22 = sadd.s32 1, %s3303_s29  ;;  %s32_s25 = ssub.s32 %s3307_s30, %s3570_s15 }
  0xb0   : > { %p42_p8 = scmp.ne.s32.totalorder %s3303_s29, %s3299_s28  ;;  %p33_p13 = scmp.eq.s32.totalorder %s32_s25, 0 }
  0xb1   : > { %p43_p0 = scmp.eq.s32.totalorder %s3307_s30, 0  ;;  %p48_p1 = scmp.ne.s32.totalorder %s3299_s28, %s3295_s27 }
  0xb2   : > { %p219_p3 = scmp.eq.s32.totalorder %s3389_s11, 1  ;;  %p4024_p5 = scmp.eq.s32.totalorder %s3389_s11, 0 }
  0xb3   : > { %s3582_s14 = scalar_select %p33_p13, %s3303_s29, %s35_s22  }
  0xb4   : > { %p44_p2 = por %p43_p0, %p42_p8  ;;  %p3586_p7 = por %p4024_p5, %p48_p1 }
  0xb5   : > { %p3590_p6 = por %p219_p3, %p42_p8  ;;  %p225_p9 = scmp.eq.s32.totalorder %s2167_s23, 1 }
  0xb6   : > { %p2946_p10 = scmp.lt.s32.totalorder %s3307_s30, 2  ;;  %s326_s13 = sand.u32 1, %s3303_s29  }
  0xb7   : > { %s4026_s24 = scalar_select %p3590_p6, 1, 0 }
  0xb8   : > { %p3596_p11 = por %p225_p9, %p48_p1  ;;  %s2177_s19 = sshll.u32 %s326_s13, 6 }
  0xb9   : > { %s2240_s16 = sshll.u32 %s3307_s30, 10  ;;  %s330_s22 = scalar_lea.vmem [#allocation4], %s2177_s19 }
  0xba   : > { %s4027_s17 = scalar_select %p3596_p11, 1, 0 }
  0xbb   : > { %s3604_s20 = scalar_lea.hbm %s4003_s0, %s2240_s16  ;;  %s337_s25 = sshll.u32 %s330_s22, 4  ;;  %s3610_s25 = int_to_ptr.vmem [resolvable:$true] %s337_s25 }
  0xbc   : > { %p3606_p12 = pnand %p2946_p10, %p44_p2  ;;  %s3612_s9 = scalar_lea.sflag [#allocation5], %s326_s13 }
  0xbd   : > { %s3195_s1 = scalar_lea.hbm %s3604_s20, 1024  ;;  %s3200_s21 = scalar_lea.hbm %s4003_s0, 2048 }
  0xbe   : > { %p3196_p4 = scmp.ne.s32.totalorder %s3604_s20, %s3195_s1  ;;  %p3197_p8 = pneg %p3606_p12 }
  0xbf   : > { %p3201_p1 = scmp.lt.u32.totalorder %s3604_s20, %s4003_s0  ;;  %p3202_p3 = scmp.lt.u32.totalorder %s3200_s21, %s3195_s1 }
  0xc0   : > { %p3198_p13 = pnand %p3197_p8, %p3196_p4  ;;  %p3204_p5 = scmp.lt.u32.totalorder %s3195_s1, %s3604_s20 }
  0xc1   : > { %p3203_p2 = por %p3202_p3, %p3201_p1 }
  0xc2   : > { %p3199_p0 = pneg %p3198_p13 }
  0xc3   : > { %p3205_p9 = por %p3204_p5, %p3203_p2 }
  0xc5   : > { %p3206_p10 = pnand %p3205_p9, %p3199_p0 }
  0xc7   : > { %3209 = shalt.err (!%p3206_p10)
}
  0xc8   : > { %s3210_s13 = scalar_lea.vmem %s3610_s25, 1024  ;;  %s3318_s19 = smov [#allocation4]  }
  0xc9   : > { %p3211_p4 = scmp.ne.s32.totalorder %s3610_s25, %s3210_s13  ;;  %s3215_s16 = sshll.u32 %s3318_s19, 4  ;;  %s3216_s16 = int_to_ptr.vmem [resolvable:$false] %s3215_s16 }
  0xca   : > { %s3217_s26 = scalar_lea.vmem %s3216_s16, 2048  ;;  %p3218_p6 = scmp.lt.s32.totalorder %s3610_s25, %s3216_s16 }
  0xcb   : > { %p3213_p13 = pnand %p3211_p4, %p3197_p8  ;;  %p3219_p1 = scmp.lt.s32.totalorder %s3217_s26, %s3210_s13 }
  0xcd   : > { %p3214_p11 = pneg %p3213_p13  ;;  %p3220_p3 = por %p3219_p1, %p3218_p6 }
  0xcf   : > { %p3221_p2 = pnand %p3220_p3, %p3214_p11 }
  0xd1   : > { %3224 = shalt.err (!%p3221_p2)
}
  0xd2   : > { %s4029_s1 = smov 8   ;;  %p4030_p8 = scmp.ne.s32.totalorder %s4019_s12, 0 }
  0xd3   : > { %2934 = dma.hbm_to_vmem [thread:$0]  (!%p3606_p12), %s3604_s20, 1024, %s3610_s25, %s3612_s9, %s4023_s18, %s4023_s18, %s4029_s1  }
  0xd4   : > { %349 = sbr.rel (%p4030_p8) target bundleno = 843 (0x34b), region = 52  ;;  %s3646_s21 = sand.u32 (!%p4030_p8), 1, %s3299_s28  }
  0xd5   : > { %s2181_s22 = sshll.u32 (!%p4030_p8), %s3646_s21, 6  ;;  %s352_s13 = scalar_lea.sflag (!%p4030_p8), [#allocation5], %s3646_s21 }
  0xd6   : > { %s3652_s23 = scalar_lea.vmem (!%p4030_p8), [#allocation4], %s2181_s22 }
  0xdb   : > { %3270 = dma.done.wait (%p3586_p7), %s352_s13, 1024  }
  0xdc   : > { %3272 = vsyncadd (%p3586_p7), %s352_s13, 4294966272  ;;  %p4031_p6 = scmp.eq.s32.totalorder %s3389_s11, 0 }
  0xde   : > { %3274 = dma.done.wait (%p4031_p6), [#allocation8], 32   ;;  %p4032_p11 = pmov %p4031_p6 }
  0xdf   : > { %p4033_p12 = pmov %p4031_p6 }
  0xe0   : > { %3276 = vsyncadd (%p4032_p11), [#allocation8], 4294967264 }
  0xe1   : > { %3278 = dma.done.wait (%p4033_p12), [#allocation11], 1040   ;;  %p4034_p0 = pmov %p4031_p6 }
  0xe3   : > { %3280 = vsyncadd (%p4034_p0), [#allocation11], 4294966256  ;;  %p4035_p5 = pmov %p4034_p0 }
  0xe4   : > { %p4036_p9 = pmov %p4034_p0 }
  0xe5   : > { %3282 = dma.done.wait (%p4035_p5), [#allocation14], 18448  }
  0xe6   : > { %3284 = vsyncadd (%p4036_p9), [#allocation14], 4294948848  ;;  %p4037_p7 = pmov %p4034_p0 }
  0xe7   : > { %p4038_p10 = pmov %p4034_p0 }
  0xe8   : > { %3286 = dma.done.wait (%p4037_p7), [#allocation17], 64  }
  0xe9   : > { %3288 = vsyncadd (%p4038_p10), [#allocation17], 4294967232  ;;  %vm416_vm0 = vcmask 130048   ;;  %vm418_vm1 = vcmask 122880   ;;  %v3319_v0 = vmov 0.0   ;;  %v518_v1 = vld [vmem:[#allocation10] sm:$0xff] }
  0xea   : > { %417 = vst.msk [vmem:[#allocation2] sm:$0xff] %vm416_vm0, %v3319_v0  ;;  %429 = vst [vmem:[#allocation3] sm:$0xff] %v3319_v0  ;;  %v519_v2 = vld [vmem:[#allocation10 + $0x8] sm:$0xff]  ;;  %v796_v3 = vld [vmem:[#allocation10 + $0x20] sm:$0xff]  ;;  %vm1896_vm2 = vcmask 1043456   ;;  %vm1871_vm3 = vcmask 31744  }
  0xeb   : > { %419 = vst.msk [vmem:[#allocation2 + $0x8] sm:$0x1] %vm418_vm1, %v3319_v0  ;;  %421 = vst.msk [vmem:[#allocation2 + $0x10] sm:$0x1] %vm418_vm1, %v3319_v0  ;;  %v2665_v4 = vpack.c.bf16 %v519_v2, %v518_v1  ;;  %v797_v5 = vld [vmem:[#allocation10 + $0x28] sm:$0xff]  ;;  %v454_v6 = vld [vmem:[%s3652_s23] sm:$0xff] }
  0xec   : > { %422 = vst.msk [vmem:[#allocation2 + $0x20] sm:$0x1] %vm418_vm1, %v3319_v0  ;;  %423 = vst.msk [vmem:[#allocation2 + $0x30] sm:$0x1] %vm418_vm1, %v3319_v0  ;;  %v2190_v7 = vld [vmem:[#allocation7] ss:$0 sm:$0xff]  ;;  %v3686_v9 = vpack.c.bf16 %v797_v5, %v796_v3 }
  0xed   : > { %424 = vst.msk [vmem:[#allocation2 + $0x40] sm:$0x1] %vm418_vm1, %v3319_v0  ;;  %425 = vst.msk [vmem:[#allocation2 + $0x50] sm:$0x1] %vm418_vm1, %v3319_v0  ;;  %v469_v10 = vmul.f32 %v2190_v7, %v454_v6  ;;  %v2191_v11 = vld [vmem:[#allocation9] ss:$0 sm:$0xff]  ;;  %2666 = vmatprep.subr.bf16.mxu0 %v2665_v4 }
  0xee   : > { %426 = vst.msk [vmem:[#allocation2 + $0x60] sm:$0x1] %vm418_vm1, %v3319_v0  ;;  %427 = vst.msk [vmem:[#allocation2 + $0x70] sm:$0x1] %vm418_vm1, %v3319_v0  ;;  %v455_v12 = vld [vmem:[%s3652_s23 + $0x8] sm:$0xff]  ;;  %v456_v14 = vld [vmem:[%s3652_s23 + $0x10] sm:$0xff]  ;;  %2668 = vmatpush3.bf16.msra.mxu0 %v2665_v4 }
  0xef   : > { %428 = vst.msk [vmem:[#allocation2 + $0x80] sm:$0x1] %vm418_vm1, %v3319_v0  ;;  %430 = vst [vmem:[#allocation3 + $0x8] sm:$0x3] %v3319_v0  ;;  %v470_v13 = vmul.f32 %v2190_v7, %v455_v12  ;;  %v457_v15 = vld [vmem:[%s3652_s23 + $0x18] sm:$0xff]  ;;  %v458_v16 = vld [vmem:[%s3652_s23 + $0x20] sm:$0xff]  ;;  %v3693_v17 = vadd.f32 %v2191_v11, %v469_v10  ;;  %v471_v18 = vmul.f32 %v2190_v7, %v456_v14  ;;  %2670 = vmatprep.subr.bf16.mxu0 %v3686_v9 }
  0xf0   : > { %432 = vst [vmem:[#allocation3 + $0x90] sm:$0xff] %v3319_v0  ;;  %433 = vst [vmem:[#allocation3 + $0x98] sm:$0x3] %v3319_v0  ;;  %v472_v19 = vmul.f32 %v2190_v7, %v457_v15  ;;  %v473_v20 = vmul.f32 %v2190_v7, %v458_v16  ;;  %v459_v21 = vld [vmem:[%s3652_s23 + $0x28] sm:$0xff]  ;;  %v460_v22 = vld [vmem:[%s3652_s23 + $0x30] sm:$0xff]  ;;  %s3942_s12 = scalar_lea.vmem [#allocation18], %s2181_s22 }
  0xf1   : > { %435 = vst [vmem:[#allocation3 + $0x10] sm:$0x1] %v3319_v0  ;;  %436 = vst [vmem:[#allocation3 + $0x20] sm:$0x1] %v3319_v0  ;;  %v3698_v23 = vadd.f32 %v2191_v11, %v470_v13  ;;  %v474_v24 = vmul.f32 %v2190_v7, %v459_v21  ;;  %v475_v25 = vmul.f32 %v2190_v7, %v460_v22  ;;  %v528_v26 = vld [vmem:[#allocation10 + $0x10] sm:$0xff]  ;;  %v529_v27 = vld [vmem:[#allocation10 + $0x18] sm:$0xff] }
  0xf2   : > { %437 = vst [vmem:[#allocation3 + $0x30] sm:$0x1] %v3319_v0  ;;  %438 = vst [vmem:[#allocation3 + $0x40] sm:$0x1] %v3319_v0  ;;  %v492_v28 = vmax.f32 %v3693_v17, 0.0  ;;  %v3701_v29 = vadd.f32 %v2191_v11, %v471_v18  ;;  %v3703_v30 = vadd.f32 %v2191_v11, %v472_v19  ;;  %v3705_v31 = vadd.f32 %v2191_v11, %v473_v20  ;;  %v461_v32 = vld [vmem:[%s3652_s23 + $0x38] sm:$0xff] }
  0xf3   : > { %439 = vst [vmem:[#allocation3 + $0x50] sm:$0x1] %v3319_v0  ;;  %440 = vst [vmem:[#allocation3 + $0x60] sm:$0x1] %v3319_v0  ;;  %v520_v33 = vld [vmem:[#allocation2 + $0x1] sm:$0xff]  ;;  %v1218_v34 = vld [vmem:[#allocation15 + $0x80] sm:$0xff]  ;;  %v3709_v36 = vadd.f32 %v2191_v11, %v474_v24  ;;  %v3711_v37 = vadd.f32 %v2191_v11, %v475_v25  ;;  %v2661_v42 = vpack.c.bf16 %v529_v27, %v528_v26 }
  0xf4   : > { %441 = vst [vmem:[#allocation3 + $0x70] sm:$0x1] %v3319_v0  ;;  %442 = vst [vmem:[#allocation3 + $0x80] sm:$0x1] %v3319_v0  ;;  %v493_v35 = vmax.f32 %v3698_v23, 0.0  ;;  %2543 = vmatprep.mubr.msk.f32.mxu1 %vm416_vm0, %v520_v33  ;;  %v1219_v38 = vld [vmem:[#allocation15 + $0x88] sm:$0xff]  ;;  %v476_v45 = vmul.f32 %v2190_v7, %v461_v32 }
  0xf5   : > { %445 = vst [vmem:[#allocation3 + $0x19] sm:$0x1] %v3319_v0  ;;  %446 = vst [vmem:[#allocation3 + $0x29] sm:$0x1] %v3319_v0  ;;  %v494_v39 = vmax.f32 %v3701_v29, 0.0  ;;  %v495_v40 = vmax.f32 %v3703_v30, 0.0  ;;  %v2677_v46 = vpack.c.bf16 %v1219_v38, %v1218_v34  ;;  %2662 = vmatprep.subr.bf16.mxu1 %v2661_v42 }
  0xf6   : > { %447 = vst [vmem:[#allocation3 + $0x39] sm:$0x1] %v3319_v0  ;;  %448 = vst [vmem:[#allocation3 + $0x49] sm:$0x1] %v3319_v0  ;;  %v496_v41 = vmax.f32 %v3705_v31, 0.0  ;;  %v497_v43 = vmax.f32 %v3709_v36, 0.0  ;;  %2664 = vmatpush3.bf16.msra.mxu1 %v2661_v42  ;;  %v3740_v49 = vadd.f32 %v2191_v11, %v476_v45 }
  0xf7   : > { %449 = vst [vmem:[#allocation3 + $0x59] sm:$0x1] %v3319_v0  ;;  %450 = vst [vmem:[#allocation3 + $0x69] sm:$0x1] %v3319_v0  ;;  %v498_v44 = vmax.f32 %v3711_v37, 0.0  ;;  %v943_v47 = vld [vmem:[#allocation10 + $0x30] sm:$0xff]  ;;  %2678 = vmatprep.subr.bf16.mxu1 %v2677_v46 }
  0xf8   : > { %451 = vst [vmem:[#allocation3 + $0x79] sm:$0x1] %v3319_v0  ;;  %452 = vst [vmem:[#allocation3 + $0x89] sm:$0x1] %v3319_v0  ;;  %v944_v48 = vld [vmem:[#allocation10 + $0x38] sm:$0xff]  ;;  %v1202_v50 = vld [vmem:[#allocation15] sm:$0xff] }
  0xf9   : > { %420 = vst.msk [vmem:[#allocation2] sm:$0x1] %vm418_vm1, %v3319_v0  ;;  %434 = vst [vmem:[#allocation3] sm:$0x1] %v3319_v0  ;;  %v1203_v51 = vld [vmem:[#allocation15 + $0x8] sm:$0xff]  ;;  %v499_v52 = vmax.f32 %v3740_v49, 0.0  ;;  %v3743_v53 = vpack.c.bf16 %v944_v48, %v943_v47 }
  0xfa   : > { %443 = vst [vmem:[#allocation3 + $0x90] sm:$0x1] %v3319_v0  ;;  %444 = vst [vmem:[#allocation3 + $0x9] sm:$0x1] %v3319_v0  ;;  %v1220_v54 = vld [vmem:[#allocation15 + $0x90] sm:$0xff]  ;;  %v2679_v57 = vpack.c.bf16 %v1203_v51, %v1202_v50  ;;  %v1221_v58 = vld [vmem:[#allocation15 + $0x98] sm:$0xff] }
  0xfb   : > { %453 = vst [vmem:[#allocation3 + $0x99] sm:$0x1] %v3319_v0  ;;  %501 = vst.msk [vmem:[#allocation2 + $0x11] sm:$0xff] %vm416_vm0, %v492_v28  ;;  %v1204_v60 = vld [vmem:[#allocation15 + $0x10] sm:$0xff]  ;;  %v1205_v61 = vld [vmem:[#allocation15 + $0x18] sm:$0xff]  ;;  %v2681_v2 = vpack.c.bf16 %v1221_v58, %v1220_v54  ;;  %s2241_s9 = sshll.u32 %s3389_s11, 10 }
  0xfc   : > { %502 = vst.msk [vmem:[#allocation2 + $0x21] sm:$0xff] %vm416_vm0, %v493_v35  ;;  %503 = vst.msk [vmem:[#allocation2 + $0x31] sm:$0xff] %vm416_vm0, %v494_v39  ;;  %v2683_v3 = vpack.c.bf16 %v1205_v61, %v1204_v60  ;;  %v1222_v4 = vld [vmem:[#allocation15 + $0xa0] sm:$0xff]  ;;  %v1223_v5 = vld [vmem:[#allocation15 + $0xa8] sm:$0xff]  ;;  %s2027_s18 = sshll.u32 %s3942_s12, 4  ;;  %s3956_s25 = scalar_lea.hbm %s4011_s8, %s2241_s9  ;;  %s3958_s18 = int_to_ptr.vmem [resolvable:$true] %s2027_s18 }
  0xfd   : > { %504 = vst.msk [vmem:[#allocation2 + $0x41] sm:$0xff] %vm416_vm0, %v495_v40  ;;  %505 = vst.msk [vmem:[#allocation2 + $0x51] sm:$0xff] %vm416_vm0, %v496_v41  ;;  %v1206_v7 = vld [vmem:[#allocation15 + $0x20] sm:$0xff]  ;;  %v2685_v12 = vpack.c.bf16 %v1223_v5, %v1222_v4  ;;  %v1224_v13 = vld [vmem:[#allocation15 + $0xb0] sm:$0xff]  ;;  %s2014_s19 = scalar_lea.sflag [#allocation6], %s3646_s21  ;;  %s3225_s16 = scalar_lea.vmem %s3958_s18, 1024 }
  0xfe   : > { %506 = vst.msk [vmem:[#allocation2 + $0x61] sm:$0xff] %vm416_vm0, %v497_v43  ;;  %507 = vst.msk [vmem:[#allocation2 + $0x71] sm:$0xff] %vm416_vm0, %v498_v44  ;;  %v1225_v14 = vld [vmem:[#allocation15 + $0xb8] sm:$0xff]  ;;  %v1208_v16 = vld [vmem:[#allocation15 + $0x30] sm:$0xff]  ;;  %p3226_p4 = scmp.ne.s32.totalorder %s3958_s18, %s3225_s16  ;;  %p4039_p13 = scmp.ne.s32.totalorder %s4026_s24, 0 }
  0xff   : > { %508 = vst.msk [vmem:[#allocation2 + $0x81] sm:$0xff] %vm416_vm0, %v499_v52  ;;  %v1209_v20 = vld [vmem:[#allocation15 + $0x38] sm:$0xff]  ;;  %v2689_v22 = vpack.c.bf16 %v1225_v14, %v1224_v13  ;;  %v1226_v24 = vld [vmem:[#allocation15 + $0xc0] sm:$0xff]  ;;  %v1227_v25 = vld [vmem:[#allocation15 + $0xc8] sm:$0xff]  ;;  %s3320_s11 = smov [#allocation18]  }
 0x100   : > { %v510_v8 = vld [vmem:[#allocation2] sm:$0xff]  ;;  %v1282_v26 = vld [vmem:[#allocation15 + $0x280] sm:$0xff]  ;;  %v2691_v32 = vpack.c.bf16 %v1209_v20, %v1208_v16  ;;  %v2693_v33 = vpack.c.bf16 %v1227_v25, %v1226_v24  ;;  %v1284_v46 = vld [vmem:[#allocation15 + $0x290] sm:$0xff]  ;;  %p3227_p1 = pnand %p3226_p4, %p4039_p13  ;;  %s3229_s26 = sshll.u32 %s3320_s11, 4  ;;  %s3230_s26 = int_to_ptr.vmem [resolvable:$false] %s3229_s26 }
 0x101   : > { %2559 = vmatprep.mubr.msk.f32.mxu0 %vm416_vm0, %v510_v8  ;;  %v1207_v8 = vld [vmem:[#allocation15 + $0x28] sm:$0xff]  ;;  %v1266_v42 = vld [vmem:[#allocation15 + $0x200] sm:$0xff]  ;;  %v1285_v47 = vld [vmem:[#allocation15 + $0x298] sm:$0xff]  ;;  %s3231_s1 = scalar_lea.vmem %s3230_s26, 2048  ;;  %p3232_p2 = scmp.lt.s32.totalorder %s3958_s18, %s3230_s26 }
 0x102   : > { %v511_v55 = vld [vmem:[#allocation2 + $0x10] sm:$0xff]  ;;  %v2687_v15 = vpack.c.bf16 %v1207_v8, %v1206_v7  ;;  %v1283_v27 = vld [vmem:[#allocation15 + $0x288] sm:$0xff]  ;;  %v2745_v50 = vpack.c.bf16 %v1285_v47, %v1284_v46  ;;  %v1268_v51 = vld [vmem:[#allocation15 + $0x210] sm:$0xff]  ;;  %p3228_p3 = pneg %p3227_p1  ;;  %p3233_p8 = scmp.lt.s32.totalorder %s3231_s1, %s3225_s16 }
 0x103   : > { %v3748_v56 = vld [vmem:[#allocation2 + $0x11] sm:$0xff]  ;;  %2560 = vmatmul.mubr.msk.f32.vlgmr.msra.gmra.mrb[0].mxu0 %vm416_vm0, %v511_v55  ;;  %v512_v59 = vld [vmem:[#allocation2 + $0x20] sm:$0xff]  ;;  %v2741_v34 = vpack.c.bf16 %v1283_v27, %v1282_v26  ;;  %v1228_v4 = vld [vmem:[#allocation15 + $0xd0] sm:$0xff] }
 0x104   : > { %2544 = vmatmul.mubr.msk.f32.vlgmr.msra.gmra.mrb[0].mxu1 %vm416_vm0, %v3748_v56  ;;  %2672 = vmatpush3.bf16.msra.mxu0 %v3686_v9  ;;  %v513_v62 = vld [vmem:[#allocation2 + $0x30] sm:$0xff]  ;;  %v3755_v63 = vld [vmem:[#allocation2 + $0x21] sm:$0xff]  ;;  %v1286_v54 = vld [vmem:[#allocation15 + $0x2a0] sm:$0xff]  ;;  %p3234_p6 = por %p3233_p8, %p3232_p2 }
 0x105   : > { %2562 = vmatprep.mubr.msk.f32.mxu0 %vm416_vm0, %v512_v59  ;;  %v514_v0 = vld [vmem:[#allocation2 + $0x40] sm:$0xff]  ;;  %2674 = vmatprep.subr.bf16.mxu0 %v3743_v53  ;;  %v3760_v1 = vld [vmem:[#allocation2 + $0x31] sm:$0xff]  ;;  %v1212_v7 = vld [vmem:[#allocation15 + $0x50] sm:$0xff] }
 0x106   : > { %2546 = vmatprep.mubr.msk.f32.mxu1 %vm416_vm0, %v3755_v63  ;;  %2680 = vmatpush3.bf16.msra.mxu1 %v2679_v57  ;;  %v3765_v6 = vld [vmem:[#allocation2 + $0x41] sm:$0xff]  ;;  %v515_v9 = vld [vmem:[#allocation2 + $0x50] sm:$0xff]  ;;  %v1230_v13 = vld [vmem:[#allocation15 + $0xe0] sm:$0xff]  ;;  %p3235_p11 = pnand %p3234_p6, %p3228_p3 }
 0x107   : > { %2563 = vmatmul.mubr.msk.f32.gmra.mrb[2].mxu0 %vm416_vm0, %v513_v62  ;;  %v3770_v10 = vld [vmem:[#allocation2 + $0x51] sm:$0xff]  ;;  %v516_v11 = vld [vmem:[#allocation2 + $0x60] sm:$0xff]  ;;  %2682 = vmatprep.subr.bf16.mxu1 %v2681_v2  ;;  %v1232_v27 = vld [vmem:[#allocation15 + $0xf0] sm:$0xff] }
 0x108   : > { %2547 = vmatmul.mubr.msk.f32.gmra.mrb[2].mxu1 %vm416_vm0, %v3760_v1  ;;  %2565 = vmatprep.mubr.msk.f32.mxu0 %vm416_vm0, %v514_v0  ;;  %v517_v18 = vld [vmem:[#allocation2 + $0x70] sm:$0xff]  ;;  %v940_v19 = vld [vmem:[#allocation2 + $0x61] sm:$0xff]  ;;  %v1214_v16 = vld [vmem:[#allocation15 + $0x60] sm:$0xff] }
 0x109   : > { %2549 = vmatprep.mubr.msk.f32.mxu1 %vm416_vm0, %v3765_v6  ;;  %v941_v21 = vld [vmem:[#allocation2 + $0x71] sm:$0xff]  ;;  %v795_v38 = vld [vmem:[#allocation2 + $0x80] sm:$0xff] }
 0x10a   : > { %2684 = vmatpush3.bf16.msra.mxu1 %v2683_v3  ;;  %v1267_v45 = vld [vmem:[#allocation15 + $0x208] sm:$0xff]  ;;  %v1289_v2 = vld [vmem:[#allocation15 + $0x2b8] sm:$0xff]  ;;  %v1274_v24 = vld [vmem:[#allocation15 + $0x240] sm:$0xff] }
 0x10b   : > { %2566 = vmatmul.mubr.msk.f32.gmra.mrb[4].mxu0 %vm416_vm0, %v515_v9  ;;  %2686 = vmatprep.subr.bf16.mxu1 %v2685_v12  ;;  %v2743_v48 = vpack.c.bf16 %v1267_v45, %v1266_v42  ;;  %v1271_v60 = vld [vmem:[#allocation15 + $0x228] sm:$0xff]  ;;  %v1229_v5 = vld [vmem:[#allocation15 + $0xd8] sm:$0xff]  ;;  %v1292_v42 = vld [vmem:[#allocation15 + $0x2d0] sm:$0xff] }
 0x10c   : > { %2550 = vmatmul.mubr.msk.f32.gmra.mrb[4].mxu1 %vm416_vm0, %v3770_v10  ;;  %2568 = vmatprep.mubr.msk.f32.mxu0 %vm416_vm0, %v516_v11  ;;  %v942_v61 = vld [vmem:[#allocation2 + $0x81] sm:$0xff]  ;;  %v1213_v8 = vld [vmem:[#allocation15 + $0x58] sm:$0xff] }
 0x10d   : > { %2552 = vmatprep.mubr.msk.f32.mxu1 %vm416_vm0, %v940_v19  ;;  %v1231_v14 = vld [vmem:[#allocation15 + $0xe8] sm:$0xff]  ;;  %v1293_v45 = vld [vmem:[#allocation15 + $0x2d8] sm:$0xff] }
 0x10e   : > { %2688 = vmatpush3.bf16.msra.mxu1 %v2687_v15  ;;  %v2701_v15 = vpack.c.bf16 %v1231_v14, %v1230_v13  ;;  %v1291_v20 = vld [vmem:[#allocation15 + $0x2c8] sm:$0xff]  ;;  %v2761_v47 = vpack.c.bf16 %v1293_v45, %v1292_v42  ;;  %v1237_v13 = vld [vmem:[#allocation15 + $0x118] sm:$0xff]  ;;  %v1330_v14 = vld [vmem:[#allocation15 + $0x400] sm:$0xff] }
 0x10f   : > { %2569 = vmatmul.mubr.msk.f32.gmra.mrb[6].mxu0 %vm416_vm0, %v517_v18  ;;  %2690 = vmatprep.subr.bf16.mxu1 %v2689_v22  ;;  %v1275_v25 = vld [vmem:[#allocation15 + $0x248] sm:$0xff]  ;;  %v1258_v42 = vld [vmem:[#allocation15 + $0x1c0] sm:$0xff] }
 0x110   : > { %2553 = vmatmul.mubr.msk.f32.gmra.mrb[6].mxu1 %vm416_vm0, %v941_v21  ;;  %2575 = vmatprep.mubr.msk.f32.mxu0 %vm416_vm0, %v511_v55  ;;  %v1287_v55 = vld [vmem:[#allocation15 + $0x2a8] sm:$0xff]  ;;  %v2759_v26 = vpack.c.bf16 %v1275_v25, %v1274_v24 }
 0x111   : > { %v2749_v58 = vpack.c.bf16 %v1287_v55, %v1286_v54  ;;  %v1294_v54 = vld [vmem:[#allocation15 + $0x2e0] sm:$0xff]  ;;  %v1295_v55 = vld [vmem:[#allocation15 + $0x2e8] sm:$0xff] }
 0x112   : > { %2692 = vmatpush3.bf16.msra.mxu1 %v2691_v32  ;;  %v1233_v32 = vld [vmem:[#allocation15 + $0xf8] sm:$0xff]  ;;  %v1239_v24 = vld [vmem:[#allocation15 + $0x128] sm:$0xff] }
 0x113   : > { %2576 = vmatmul.mubr.msk.f32.vlgmr.msra.gmra.mrb[0].mxu0 %vm416_vm0, %v512_v59  ;;  %2694 = vmatprep.subr.bf16.mxu1 %v2693_v33  ;;  %v1270_v59 = vld [vmem:[#allocation15 + $0x220] sm:$0xff]  ;;  %v2705_v33 = vpack.c.bf16 %v1233_v32, %v1232_v27  ;;  %v1257_v27 = vld [vmem:[#allocation15 + $0x1b8] sm:$0xff]  ;;  %v1259_v45 = vld [vmem:[#allocation15 + $0x1c8] sm:$0xff] }
 0x114   : > { %2676 = vmatpush3.bf16.msra.mxu0 %v3743_v53  ;;  %2578 = vmatprep.mubr.msk.f32.mxu0 %vm416_vm0, %v513_v62  ;;  %v1269_v53 = vld [vmem:[#allocation15 + $0x218] sm:$0xff]  ;;  %v1210_v62 = vld [vmem:[#allocation15 + $0x40] sm:$0xff]  ;;  %v1193_v31 = vld [vmem:[#allocation3 + $0x91] sm:$0xff] }
 0x115   : > { %2742 = vmatprep.subr.bf16.mxu0 %v2741_v34  ;;  %v2747_v57 = vpack.c.bf16 %v1269_v53, %v1268_v51  ;;  %v1216_v34 = vld [vmem:[#allocation15 + $0x70] sm:$0xff]  ;;  %v1137_v53 = vld [vmem:[#allocation3 + $0x1] sm:$0xff] }
 0x116   : > { %1410 = vmatprep.mubr.f32.mxu1 %v1137_v53  ;;  %v1261_v53 = vld [vmem:[#allocation15 + $0x1d8] sm:$0xff] }
 0x117   : > { %2579 = vmatmul.mubr.msk.f32.gmra.mrb[2].mxu0 %vm416_vm0, %v514_v0  ;;  %v1288_v0 = vld [vmem:[#allocation15 + $0x2b0] sm:$0xff] }
 0x118   : > { %2581 = vmatprep.mubr.msk.f32.mxu0 %vm416_vm0, %v515_v9  ;;  %v2753_v3 = vpack.c.bf16 %v1289_v2, %v1288_v0  ;;  %v2699_v9 = vpack.c.bf16 %v1213_v8, %v1212_v7  ;;  %v1234_v0 = vld [vmem:[#allocation15 + $0x100] sm:$0xff]  ;;  %v1296_v2 = vld [vmem:[#allocation15 + $0x2f0] sm:$0xff] }
 0x11b   : > { %2582 = vmatmul.mubr.msk.f32.gmra.mrb[4].mxu0 %vm416_vm0, %v516_v11  ;;  %v1273_v11 = vld [vmem:[#allocation15 + $0x238] sm:$0xff] }
 0x11c   : > { %2584 = vmatprep.mubr.msk.f32.mxu0 %vm416_vm0, %v517_v18  ;;  %v1215_v18 = vld [vmem:[#allocation15 + $0x68] sm:$0xff] }
 0x11f   : > { %2585 = vmatmul.mubr.msk.f32.gmra.mrb[6].mxu0 %vm416_vm0, %v795_v38  ;;  %v1217_v38 = vld [vmem:[#allocation15 + $0x78] sm:$0xff] }
 0x120   : > { %2591 = vmatprep.mubr.msk.f32.mxu0 %vm416_vm0, %v3748_v56  ;;  %v2751_v56 = vpack.c.bf16 %v1271_v60, %v1270_v59  ;;  %v2707_v46 = vpack.c.bf16 %v1217_v38, %v1216_v34  ;;  %v1278_v59 = vld [vmem:[#allocation15 + $0x260] sm:$0xff]  ;;  %v1279_v60 = vld [vmem:[#allocation15 + $0x268] sm:$0xff]  ;;  %v1241_v34 = vld [vmem:[#allocation15 + $0x138] sm:$0xff] }
 0x123   : > { %2592 = vmatmul.mubr.msk.f32.vlgmr.msra.gmra.mrb[0].mxu0 %vm416_vm0, %v3755_v63  ;;  %v1211_v63 = vld [vmem:[#allocation15 + $0x48] sm:$0xff] }
 0x124   : > { %2594 = vmatprep.mubr.msk.f32.mxu0 %vm416_vm0, %v3760_v1  ;;  %2744 = vmatpush3.bf16.msra.mxu0 %v2743_v48  ;;  %v2695_v1 = vpack.c.bf16 %v1211_v63, %v1210_v62  ;;  %v1276_v48 = vld [vmem:[#allocation15 + $0x250] sm:$0xff]  ;;  %v1251_v62 = vld [vmem:[#allocation15 + $0x188] sm:$0xff] }
 0x125   : > { %2746 = vmatprep.subr.bf16.mxu0 %v2745_v50  ;;  %v1277_v50 = vld [vmem:[#allocation15 + $0x258] sm:$0xff] }
 0x126   : > { %2696 = vmatpush3.bf16.msra.mxu1 %v2695_v1  ;;  %v2763_v51 = vpack.c.bf16 %v1277_v50, %v1276_v48  ;;  %v1235_v1 = vld [vmem:[#allocation15 + $0x108] sm:$0xff] }
 0x127   : > { %2595 = vmatmul.mubr.msk.f32.gmra.mrb[2].mxu0 %vm416_vm0, %v3765_v6  ;;  %v2697_v6 = vpack.c.bf16 %v1229_v5, %v1228_v4  ;;  %v1297_v4 = vld [vmem:[#allocation15 + $0x2f8] sm:$0xff]  ;;  %v1280_v5 = vld [vmem:[#allocation15 + $0x270] sm:$0xff]  ;;  %v1243_v48 = vld [vmem:[#allocation15 + $0x148] sm:$0xff] }
 0x128   : > { %2597 = vmatprep.mubr.msk.f32.mxu0 %vm416_vm0, %v3770_v10  ;;  %2748 = vmatpush3.bf16.msra.mxu0 %v2747_v57  ;;  %v1272_v10 = vld [vmem:[#allocation15 + $0x230] sm:$0xff]  ;;  %v1129_v57 = vld [vmem:[#allocation3] sm:$0xff]  ;;  %v2769_v7 = vpack.c.bf16 %v1297_v4, %v1296_v2 }
 0x129   : > { %2750 = vmatprep.subr.bf16.mxu0 %v2749_v58  ;;  %2698 = vmatprep.subr.bf16.mxu1 %v2697_v6  ;;  %v2755_v12 = vpack.c.bf16 %v1273_v11, %v1272_v10  ;;  %v2765_v58 = vpack.c.bf16 %v1295_v55, %v1294_v54  ;;  %v1281_v6 = vld [vmem:[#allocation15 + $0x278] sm:$0xff]  ;;  %v1244_v55 = vld [vmem:[#allocation15 + $0x150] sm:$0xff] }
 0x12a   : > { %2700 = vmatpush3.bf16.msra.mxu1 %v2699_v9  ;;  %v2771_v8 = vpack.c.bf16 %v1281_v6, %v1280_v5  ;;  %v1252_v9 = vld [vmem:[#allocation15 + $0x190] sm:$0xff]  ;;  %v1253_v10 = vld [vmem:[#allocation15 + $0x198] sm:$0xff]  ;;  %v1314_v6 = vld [vmem:[#allocation15 + $0x380] sm:$0xff] }
 0x12b   : > { %2598 = vmatmul.mubr.msk.f32.gmra.mrb[4].mxu0 %vm416_vm0, %v940_v19  ;;  %v1290_v19 = vld [vmem:[#allocation15 + $0x2c0] sm:$0xff]  ;;  %2702 = vmatprep.subr.bf16.mxu1 %v2701_v15  ;;  %v2713_v11 = vpack.c.bf16 %v1253_v10, %v1252_v9  ;;  %v1249_v4 = vld [vmem:[#allocation15 + $0x178] sm:$0xff] }
 0x12c   : > { %2600 = vmatprep.mubr.msk.f32.mxu0 %vm416_vm0, %v941_v21  ;;  %2752 = vmatpush3.bf16.msra.mxu0 %v2751_v56  ;;  %v2703_v21 = vpack.c.bf16 %v1215_v18, %v1214_v16  ;;  %v2757_v22 = vpack.c.bf16 %v1291_v20, %v1290_v19  ;;  %v2767_v56 = vpack.c.bf16 %v1279_v60, %v1278_v59  ;;  %v1331_v16 = vld [vmem:[#allocation15 + $0x408] sm:$0xff]  ;;  %v1254_v19 = vld [vmem:[#allocation15 + $0x1a0] sm:$0xff] }
 0x12d   : > { %2754 = vmatprep.subr.bf16.mxu0 %v2753_v3  ;;  %v2711_v3 = vpack.c.bf16 %v1235_v1, %v1234_v0  ;;  %v3801_v18 = vpack.c.bf16 %v1331_v16, %v1330_v14  ;;  %v1255_v20 = vld [vmem:[#allocation15 + $0x1a8] sm:$0xff]  ;;  %v1262_v59 = vld [vmem:[#allocation15 + $0x1e0] sm:$0xff]  ;;  %v1264_v0 = vld [vmem:[#allocation15 + $0x1f0] sm:$0xff] }
 0x12e   : > { %2704 = vmatpush3.bf16.msra.mxu1 %v2703_v21  ;;  %v2717_v21 = vpack.c.bf16 %v1255_v20, %v1254_v19  ;;  %v1263_v60 = vld [vmem:[#allocation15 + $0x1e8] sm:$0xff]  ;;  %v1265_v1 = vld [vmem:[#allocation15 + $0x1f8] sm:$0xff] }
 0x12f   : > { %2601 = vmatmul.mubr.msk.f32.gmra.mrb[6].mxu0 %vm416_vm0, %v942_v61  ;;  %2706 = vmatprep.subr.bf16.mxu1 %v2705_v33  ;;  %v1250_v61 = vld [vmem:[#allocation15 + $0x180] sm:$0xff]  ;;  %v1240_v33 = vld [vmem:[#allocation15 + $0x130] sm:$0xff]  ;;  %v2737_v2 = vpack.c.bf16 %v1265_v1, %v1264_v0  ;;  %v2224_v20 = vld [vmem:[#allocation12] ss:$0 sm:$0xff] }
 0x130   : > { %2756 = vmatpush3.bf16.msra.mxu0 %v2755_v12  ;;  %v2709_v63 = vpack.c.bf16 %v1251_v62, %v1250_v61  ;;  %v1236_v12 = vld [vmem:[#allocation15 + $0x110] sm:$0xff]  ;;  %v2723_v38 = vpack.c.bf16 %v1241_v34, %v1240_v33  ;;  %v1246_v61 = vld [vmem:[#allocation15 + $0x160] sm:$0xff]  ;;  %v1247_v62 = vld [vmem:[#allocation15 + $0x168] sm:$0xff] }
 0x131   : > { %2758 = vmatprep.subr.bf16.mxu0 %v2757_v22  ;;  %v2715_v15 = vpack.c.bf16 %v1237_v13, %v1236_v12  ;;  %v1238_v22 = vld [vmem:[#allocation15 + $0x120] sm:$0xff] }
 0x132   : > { %2708 = vmatpush3.bf16.msra.mxu1 %v2707_v46  ;;  %v2719_v25 = vpack.c.bf16 %v1239_v24, %v1238_v22  ;;  %v2725_v46 = vpack.c.bf16 %v1259_v45, %v1258_v42  ;;  %v2225_v24 = vld [vmem:[#allocation13] ss:$0 sm:$0xff] }
 0x133   : > { %2710 = vmatprep.subr.bf16.mxu1 %v2709_v63  ;;  %v2735_v63 = vpack.c.bf16 %v1247_v62, %v1246_v61 }
 0x134   : > { %2760 = vmatpush3.bf16.msra.mxu0 %v2759_v26  ;;  %v1256_v26 = vld [vmem:[#allocation15 + $0x1b0] sm:$0xff] }
 0x135   : > { %2762 = vmatprep.subr.bf16.mxu0 %v2761_v47  ;;  %1411 = vmatmul.mubr.f32.vlgmr.msra.gmra.mrb[8].mxu1 %v1129_v57  ;;  %v2721_v32 = vpack.c.bf16 %v1257_v27, %v1256_v26  ;;  %v1242_v47 = vld [vmem:[#allocation15 + $0x140] sm:$0xff]  ;;  %v1245_v57 = vld [vmem:[#allocation15 + $0x158] sm:$0xff] }
 0x136   : > { %2712 = vmatpush3.bf16.msra.mxu1 %v2711_v3  ;;  %v2727_v50 = vpack.c.bf16 %v1243_v48, %v1242_v47  ;;  %v1248_v3 = vld [vmem:[#allocation15 + $0x170] sm:$0xff] }
 0x137   : > { %2714 = vmatprep.subr.bf16.mxu1 %v2713_v11  ;;  %v2739_v5 = vpack.c.bf16 %v1249_v4, %v1248_v3  ;;  %v1332_v4 = vld [vmem:[#allocation15 + $0x410] sm:$0xff] }
 0x138   : > { %2764 = vmatpush3.bf16.msra.mxu0 %v2763_v51  ;;  %v1260_v51 = vld [vmem:[#allocation15 + $0x1d0] sm:$0xff] }
 0x139   : > { %2766 = vmatprep.subr.bf16.mxu0 %v2765_v58  ;;  %v2729_v54 = vpack.c.bf16 %v1261_v53, %v1260_v51  ;;  %v2731_v58 = vpack.c.bf16 %v1245_v57, %v1244_v55 }
 0x13a   : > { %2716 = vmatpush3.bf16.msra.mxu1 %v2715_v15 }
 0x13b   : > { %2718 = vmatprep.subr.bf16.mxu1 %v2717_v21 }
 0x13c   : > { %2768 = vmatpush3.bf16.msra.mxu0 %v2767_v56  ;;  %v2733_v56 = vpack.c.bf16 %v1263_v60, %v1262_v59 }
 0x13d   : > { %2770 = vmatprep.subr.bf16.mxu0 %v2769_v7  ;;  %v1315_v7 = vld [vmem:[#allocation15 + $0x388] sm:$0xff] }
 0x13e   : > { %2720 = vmatpush3.bf16.msra.mxu1 %v2719_v25 }
 0x13f   : > { %2722 = vmatprep.subr.bf16.mxu1 %v2721_v32 }
 0x140   : > { %2772 = vmatpush3.bf16.msra.mxu0 %v2771_v8  ;;  %v2773_v8 = vpack.c.bf16 %v1315_v7, %v1314_v6 }
 0x141   : > { %2806 = vmatprep.subr.bf16.mxu0 %v3801_v18 }
 0x142   : > { %2724 = vmatpush3.bf16.msra.mxu1 %v2723_v38 }
 0x143   : > { %2726 = vmatprep.subr.bf16.mxu1 %v2725_v46 }
 0x146   : > { %2728 = vmatpush3.bf16.msra.mxu1 %v2727_v50 }
 0x147   : > { %2730 = vmatprep.subr.bf16.mxu1 %v2729_v54 }
 0x14a   : > { %2732 = vmatpush3.bf16.msra.mxu1 %v2731_v58 }
 0x14b   : > { %2734 = vmatprep.subr.bf16.mxu1 %v2733_v56 }
 0x14e   : > { %2736 = vmatpush3.bf16.msra.mxu1 %v2735_v63 }
 0x14f   : > { %2738 = vmatprep.subr.bf16.mxu1 %v2737_v2 }
 0x152   : > { %2740 = vmatpush3.bf16.msra.mxu1 %v2739_v5  ;;  %v1333_v5 = vld [vmem:[#allocation15 + $0x418] sm:$0xff] }
 0x153   : > { %2774 = vmatprep.subr.bf16.mxu1 %v2773_v8 }
 0x1d7   : > { %v2545_v9 = vpop.f32.mrb[0].mxu1 }
 0x1d8   : > { %v620_v10 = vpop.f32.mrb[1].mxu1 }
 0x1db   : > { %v2548_v11 = vpop.f32.mrb[2].mxu1 }
 0x1dc   : > { %v630_v12 = vpop.f32.mrb[3].mxu1 }
 0x1df   : > { %v2551_v13 = vpop.f32.mrb[4].mxu1 }
 0x1e0   : > { %v640_v14 = vpop.f32.mrb[5].mxu1 }
 0x1e3   : > { %v2554_v15 = vpop.f32.mrb[6].mxu1 }
 0x1e4   : > { %v650_v16 = vpop.f32.mrb[7].mxu1 }
 0x1f6   : > { %v2593_v19 = vpop.f32.mrb[0].mxu0 }
 0x1f7   : > { %v2837_v21 = vadd.f32 %v2593_v19, %v2545_v9  ;;  %v1035_v22 = vpop.f32.mrb[1].mxu0 }
 0x1f8   : > { %v2838_v25 = vadd.f32 %v1035_v22, %v620_v10 }
 0x1f9   : > { %v1090_v26 = vmul.f32 %v2837_v21, %v2224_v20 }
 0x1fa   : > { %v1089_v27 = vmul.f32 %v2838_v25, %v2224_v20  ;;  %v2596_v32 = vpop.f32.mrb[2].mxu0  ;;  %v1336_v25 = vld [vmem:[#allocation15 + $0x430] sm:$0xff] }
 0x1fb   : > { %v1105_v33 = vadd.f32 %v2225_v24, %v1090_v26  ;;  %v2839_v34 = vadd.f32 %v2596_v32, %v2548_v11  ;;  %v1045_v38 = vpop.f32.mrb[3].mxu0  ;;  %v1337_v26 = vld [vmem:[#allocation15 + $0x438] sm:$0xff] }
 0x1fc   : > { %v1104_v42 = vadd.f32 %v2225_v24, %v1089_v27  ;;  %v2840_v45 = vadd.f32 %v1045_v38, %v630_v12  ;;  %v2817_v32 = vpack.c.bf16 %v1337_v26, %v1336_v25  ;;  %v509_v26 = vld [vmem:[#allocation16] sm:$0xf] }
 0x1fd   : > { %v3804_v46 = vmax.f32 %v1105_v33, 0.0  ;;  %v1092_v47 = vmul.f32 %v2839_v34, %v2224_v20  ;;  %v1338_v33 = vld [vmem:[#allocation15 + $0x440] sm:$0xff]  ;;  %v1339_v34 = vld [vmem:[#allocation15 + $0x448] sm:$0xff] }
 0x1fe   : > { %v1112_v48 = vmax.f32 %v1104_v42, 0.0  ;;  %v1091_v50 = vmul.f32 %v2840_v45, %v2224_v20  ;;  %v2599_v51 = vpop.f32.mrb[4].mxu0  ;;  %v2821_v45 = vpack.c.bf16 %v1339_v34, %v1338_v33  ;;  %v1320_v34 = vld [vmem:[#allocation15 + $0x3b0] sm:$0xff] }
 0x1ff   : > { %1122 = vst [vmem:[#allocation3 + $0x21] sm:$0xff] %v3804_v46  ;;  %v1107_v53 = vadd.f32 %v2225_v24, %v1092_v47  ;;  %v2841_v54 = vadd.f32 %v2599_v51, %v2551_v13  ;;  %v1055_v55 = vpop.f32.mrb[5].mxu0  ;;  %v2809_v13 = vpack.c.bf16 %v1333_v5, %v1332_v4  ;;  %v1340_v47 = vld [vmem:[#allocation15 + $0x450] sm:$0xff]  ;;  %v1317_v5 = vld [vmem:[#allocation15 + $0x398] sm:$0xff] }
 0x200   : > { %1121 = vst [vmem:[#allocation3 + $0x11] sm:$0xff] %v1112_v48  ;;  %v1106_v57 = vadd.f32 %v2225_v24, %v1091_v50  ;;  %v2842_v58 = vadd.f32 %v1055_v55, %v640_v14  ;;  %1415 = vmatprep.mubr.f32.mxu1 %v1112_v48  ;;  %v1343_v55 = vld [vmem:[#allocation15 + $0x468] sm:$0xff]  ;;  %v1316_v4 = vld [vmem:[#allocation15 + $0x390] sm:$0xff] }
 0x201   : > { %v3807_v59 = vmax.f32 %v1107_v53, 0.0  ;;  %v1094_v60 = vmul.f32 %v2841_v54, %v2224_v20  ;;  %v1342_v54 = vld [vmem:[#allocation15 + $0x460] sm:$0xff] }
 0x202   : > { %v3809_v56 = vmax.f32 %v1106_v57, 0.0  ;;  %v1093_v61 = vmul.f32 %v2842_v58, %v2224_v20  ;;  %v2602_v62 = vpop.f32.mrb[6].mxu0 }
 0x203   : > { %1124 = vst [vmem:[#allocation3 + $0x41] sm:$0xff] %v3807_v59  ;;  %v1109_v63 = vadd.f32 %v2225_v24, %v1094_v60  ;;  %v2843_v0 = vadd.f32 %v2602_v62, %v2554_v15  ;;  %v1065_v1 = vpop.f32.mrb[7].mxu0  ;;  %v1334_v15 = vld [vmem:[#allocation15 + $0x420] sm:$0xff]  ;;  %v2829_v60 = vpack.c.bf16 %v1343_v55, %v1342_v54  ;;  %v1345_v62 = vld [vmem:[#allocation15 + $0x478] sm:$0xff]  ;;  %v1323_v55 = vld [vmem:[#allocation15 + $0x3c8] sm:$0xff] }
 0x204   : > { %1123 = vst [vmem:[#allocation3 + $0x31] sm:$0xff] %v3809_v56  ;;  %v1108_v2 = vadd.f32 %v2225_v24, %v1093_v61  ;;  %v2844_v3 = vadd.f32 %v1065_v1, %v650_v16  ;;  %v1335_v16 = vld [vmem:[#allocation15 + $0x428] sm:$0xff]  ;;  %v1344_v61 = vld [vmem:[#allocation15 + $0x470] sm:$0xff] }
 0x205   : > { %v3813_v6 = vmax.f32 %v1109_v63, 0.0  ;;  %v1096_v7 = vmul.f32 %v2843_v0, %v2224_v20  ;;  %v1298_v0 = vld [vmem:[#allocation15 + $0x300] sm:$0xff]  ;;  %v1299_v1 = vld [vmem:[#allocation15 + $0x308] sm:$0xff] }
 0x206   : > { %v3815_v8 = vmax.f32 %v1108_v2, 0.0  ;;  %v1095_v9 = vmul.f32 %v2844_v3, %v2224_v20  ;;  %v3828_v20 = vld [vmem:[#allocation3 + $0x22] sm:$0xff]  ;;  %v2833_v3 = vpack.c.bf16 %v1345_v62, %v1344_v61  ;;  %v1307_v62 = vld [vmem:[#allocation15 + $0x348] sm:$0xff] }
 0x207   : > { %1126 = vst [vmem:[#allocation3 + $0x61] sm:$0xff] %v3813_v6  ;;  %v1111_v10 = vadd.f32 %v2225_v24, %v1096_v7  ;;  %v3818_v11 = vld [vmem:[#allocation3 + $0x12] sm:$0xff]  ;;  %v3835_v22 = vld [vmem:[#allocation3 + $0x20] sm:$0xff]  ;;  %v1306_v61 = vld [vmem:[#allocation15 + $0x340] sm:$0xff] }
 0x208   : > { %v3820_v12 = vld [vmem:[#allocation3 + $0x10] sm:$0xff]  ;;  %1125 = vst [vmem:[#allocation3 + $0x51] sm:$0xff] %v3815_v8  ;;  %v1110_v14 = vadd.f32 %v2225_v24, %v1095_v9  ;;  %1620 = vmatprep.mubr.f32.mxu0 %v3818_v11  ;;  %v2813_v24 = vpack.c.bf16 %v1335_v16, %v1334_v15  ;;  %v1145_v9 = vld [vmem:[#allocation3 + $0x2] sm:$0xff]  ;;  %v2777_v15 = vpack.c.bf16 %v1317_v5, %v1316_v4 }
 0x209   : > { %1416 = vmatmul.mubr.f32.gmra.mrb[10].mxu1 %v3820_v12  ;;  %v3825_v19 = vmax.f32 %v1111_v10, 0.0  ;;  %1621 = vmatmul.mubr.f32.vlgmr.msra.gmra.mrb[8].mxu0 %v1112_v48  ;;  %v1341_v48 = vld [vmem:[#allocation15 + $0x458] sm:$0xff]  ;;  %v2775_v10 = vpack.c.bf16 %v1299_v1, %v1298_v0  ;;  %v1318_v16 = vld [vmem:[#allocation15 + $0x3a0] sm:$0xff]  ;;  %v1324_v1 = vld [vmem:[#allocation15 + $0x3d0] sm:$0xff] }
 0x20a   : > { %1420 = vmatprep.mubr.f32.mxu1 %v3804_v46  ;;  %v3830_v21 = vmax.f32 %v1110_v14, 0.0  ;;  %1625 = vmatprep.mubr.f32.mxu0 %v3828_v20  ;;  %v3849_v38 = vld [vmem:[#allocation3 + $0x42] sm:$0xff]  ;;  %v2825_v53 = vpack.c.bf16 %v1341_v48, %v1340_v47  ;;  %v1304_v48 = vld [vmem:[#allocation15 + $0x330] sm:$0xff] }
 0x20b   : > { %2808 = vmatpush3.bf16.msra.mxu0 %v3801_v18  ;;  %1128 = vst [vmem:[#allocation3 + $0x81] sm:$0xff] %v3825_v19  ;;  %v3841_v27 = vld [vmem:[#allocation3 + $0x32] sm:$0xff]  ;;  %v3852_v42 = vld [vmem:[#allocation3 + $0x40] sm:$0xff] }
 0x20c   : > { %2810 = vmatprep.subr.bf16.mxu0 %v2809_v13  ;;  %1127 = vst [vmem:[#allocation3 + $0x71] sm:$0xff] %v3830_v21  ;;  %v3844_v18 = vld [vmem:[#allocation3 + $0x30] sm:$0xff]  ;;  %v1301_v14 = vld [vmem:[#allocation15 + $0x318] sm:$0xff] }
 0x20d   : > { %1421 = vmatmul.mubr.f32.gmra.mrb[12].mxu1 %v3835_v22  ;;  %1626 = vmatmul.mubr.f32.gmra.mrb[10].mxu0 %v3804_v46  ;;  %v1201_v4 = vld [vmem:[#allocation3 + $0x92] sm:$0xff] }
 0x20e   : > { %1425 = vmatprep.mubr.f32.mxu1 %v3809_v56  ;;  %1630 = vmatprep.mubr.f32.mxu0 %v3841_v27  ;;  %v3865_v57 = vld [vmem:[#allocation3 + $0x62] sm:$0xff] }
 0x20f   : > { %2812 = vmatpush3.bf16.msra.mxu0 %v2809_v13  ;;  %v3857_v50 = vld [vmem:[#allocation3 + $0x52] sm:$0xff]  ;;  %v3868_v58 = vld [vmem:[#allocation3 + $0x60] sm:$0xff] }
 0x210   : > { %2814 = vmatprep.subr.bf16.mxu0 %v2813_v24  ;;  %v3860_v51 = vld [vmem:[#allocation3 + $0x50] sm:$0xff]  ;;  %v1300_v13 = vld [vmem:[#allocation15 + $0x310] sm:$0xff] }
 0x211   : > { %1426 = vmatmul.mubr.f32.gmra.mrb[14].mxu1 %v3844_v18  ;;  %1631 = vmatmul.mubr.f32.gmra.mrb[12].mxu0 %v3809_v56  ;;  %v2779_v25 = vpack.c.bf16 %v1301_v14, %v1300_v13  ;;  %v1326_v13 = vld [vmem:[#allocation15 + $0x3e0] sm:$0xff]  ;;  %v1327_v14 = vld [vmem:[#allocation15 + $0x3e8] sm:$0xff] }
 0x212   : > { %1430 = vmatprep.mubr.f32.mxu1 %v3807_v59  ;;  %1635 = vmatprep.mubr.f32.mxu0 %v3849_v38  ;;  %v1176_v7 = vld [vmem:[#allocation3 + $0x82] sm:$0xff] }
 0x213   : > { %2816 = vmatpush3.bf16.msra.mxu0 %v2813_v24  ;;  %v3873_v63 = vld [vmem:[#allocation3 + $0x72] sm:$0xff]  ;;  %v1160_v17 = vld [vmem:[#allocation3 + $0x80] sm:$0xff] }
 0x214   : > { %2818 = vmatprep.subr.bf16.mxu0 %v2817_v32  ;;  %v3876_v2 = vld [vmem:[#allocation3 + $0x70] sm:$0xff] }
 0x215   : > { %1431 = vmatmul.mubr.f32.gmra.mrb[16].mxu1 %v3852_v42  ;;  %1636 = vmatmul.mubr.f32.gmra.mrb[14].mxu0 %v3807_v59  ;;  %v1319_v24 = vld [vmem:[#allocation15 + $0x3a8] sm:$0xff] }
 0x216   : > { %1435 = vmatprep.mubr.f32.mxu1 %v3815_v8  ;;  %1640 = vmatprep.mubr.f32.mxu0 %v3857_v50  ;;  %v2781_v33 = vpack.c.bf16 %v1319_v24, %v1318_v16  ;;  %v1310_v16 = vld [vmem:[#allocation15 + $0x360] sm:$0xff]  ;;  %v1311_v24 = vld [vmem:[#allocation15 + $0x368] sm:$0xff] }
 0x217   : > { %2820 = vmatpush3.bf16.msra.mxu0 %v2817_v32  ;;  %v1303_v32 = vld [vmem:[#allocation15 + $0x328] sm:$0xff] }
 0x218   : > { %2822 = vmatprep.subr.bf16.mxu0 %v2821_v45 }
 0x219   : > { %1436 = vmatmul.mubr.f32.gmra.mrb[18].mxu1 %v3860_v51  ;;  %1641 = vmatmul.mubr.f32.gmra.mrb[16].mxu0 %v3815_v8 }
 0x21a   : > { %1440 = vmatprep.mubr.f32.mxu1 %v3813_v6  ;;  %1645 = vmatprep.mubr.f32.mxu0 %v3865_v57 }
 0x21b   : > { %2824 = vmatpush3.bf16.msra.mxu0 %v2821_v45  ;;  %v1321_v45 = vld [vmem:[#allocation15 + $0x3b8] sm:$0xff] }
 0x21c   : > { %2826 = vmatprep.subr.bf16.mxu0 %v2825_v53  ;;  %v2785_v54 = vpack.c.bf16 %v1321_v45, %v1320_v34 }
 0x21d   : > { %1441 = vmatmul.mubr.f32.gmra.mrb[20].mxu1 %v3868_v58  ;;  %1646 = vmatmul.mubr.f32.gmra.mrb[18].mxu0 %v3813_v6 }
 0x21e   : > { %1445 = vmatprep.mubr.f32.mxu1 %v3830_v21  ;;  %1650 = vmatprep.mubr.f32.mxu0 %v3873_v63 }
 0x21f   : > { %2828 = vmatpush3.bf16.msra.mxu0 %v2825_v53  ;;  %v1305_v53 = vld [vmem:[#allocation15 + $0x338] sm:$0xff] }
 0x220   : > { %2830 = vmatprep.subr.bf16.mxu0 %v2829_v60 }
 0x221   : > { %1446 = vmatmul.mubr.f32.gmra.mrb[22].mxu1 %v3876_v2  ;;  %1651 = vmatmul.mubr.f32.gmra.mrb[20].mxu0 %v3830_v21 }
 0x222   : > { %1515 = vmatprep.mubr.f32.mxu1 %v3820_v12  ;;  %1655 = vmatprep.mubr.f32.mxu0 %v1176_v7  ;;  %v1302_v12 = vld [vmem:[#allocation15 + $0x320] sm:$0xff] }
 0x223   : > { %2832 = vmatpush3.bf16.msra.mxu0 %v2829_v60  ;;  %v2783_v47 = vpack.c.bf16 %v1303_v32, %v1302_v12  ;;  %v2787_v60 = vpack.c.bf16 %v1305_v53, %v1304_v48  ;;  %v1312_v12 = vld [vmem:[#allocation15 + $0x370] sm:$0xff]  ;;  %v1313_v32 = vld [vmem:[#allocation15 + $0x378] sm:$0xff] }
 0x224   : > { %2834 = vmatprep.subr.bf16.mxu0 %v2833_v3  ;;  %v2803_v23 = vpack.c.bf16 %v1313_v32, %v1312_v12 }
 0x225   : > { %1516 = vmatmul.mubr.f32.vlgmr.msra.gmra.mrb[24].mxu1 %v1145_v9  ;;  %1656 = vmatmul.mubr.f32.gmra.mrb[22].mxu0 %v3825_v19  ;;  %v1308_v9 = vld [vmem:[#allocation15 + $0x350] sm:$0xff] }
 0x226   : > { %2776 = vmatpush3.bf16.msra.mxu1 %v2775_v10  ;;  %1520 = vmatprep.mubr.f32.mxu1 %v3835_v22  ;;  %v1309_v10 = vld [vmem:[#allocation15 + $0x358] sm:$0xff] }
 0x227   : > { %2836 = vmatpush3.bf16.msra.mxu0 %v2833_v3  ;;  %2635 = vmatprep.mubr.f32.mxu0 %v3828_v20  ;;  %v1325_v3 = vld [vmem:[#allocation15 + $0x3d8] sm:$0xff] }
 0x228   : > { %2778 = vmatprep.subr.bf16.mxu1 %v2777_v15  ;;  %2647 = vmatprep.subr.msk.mxu0 %vm1896_vm2, %v509_v26  ;;  %v2793_v5 = vpack.c.bf16 %v1325_v3, %v1324_v1  ;;  %v2797_v15 = vpack.c.bf16 %v1327_v14, %v1326_v13 }
 0x229   : > { %1521 = vmatmul.mubr.f32.gmra.mrb[26].mxu1 %v3818_v11  ;;  %v1322_v11 = vld [vmem:[#allocation15 + $0x3c0] sm:$0xff] }
 0x22a   : > { %2780 = vmatpush3.bf16.msra.mxu1 %v2779_v25  ;;  %2636 = vmatmul.mubr.f32.vlgmr.msra.gmra.mrb[24].mxu0 %v3841_v27  ;;  %v2789_v0 = vpack.c.bf16 %v1323_v55, %v1322_v11  ;;  %v1329_v25 = vld [vmem:[#allocation15 + $0x3f8] sm:$0xff] }
 0x22b   : > { %1525 = vmatprep.mubr.f32.mxu1 %v3844_v18  ;;  %2638 = vmatprep.mubr.f32.mxu0 %v3849_v38 }
 0x22c   : > { %2782 = vmatprep.subr.bf16.mxu1 %v2781_v33  ;;  %2648 = vmatpush3.msk.msra.mxu0 %vm1896_vm2, %v509_v26 }
 0x22d   : > { %1526 = vmatmul.mubr.f32.gmra.mrb[28].mxu1 %v3828_v20  ;;  %v2791_v20 = vpack.c.bf16 %v1307_v62, %v1306_v61 }
 0x22e   : > { %2784 = vmatpush3.bf16.msra.mxu1 %v2783_v47  ;;  %2639 = vmatmul.mubr.f32.gmra.mrb[26].mxu0 %v3857_v50 }
 0x22f   : > { %1530 = vmatprep.mubr.f32.mxu1 %v3852_v42  ;;  %2641 = vmatprep.mubr.f32.mxu0 %v3865_v57 }
 0x230   : > { %2786 = vmatprep.subr.bf16.mxu1 %v2785_v54 }
 0x231   : > { %1531 = vmatmul.mubr.f32.gmra.mrb[30].mxu1 %v3841_v27  ;;  %v2795_v27 = vpack.c.bf16 %v1309_v10, %v1308_v9 }
 0x232   : > { %2788 = vmatpush3.bf16.msra.mxu1 %v2787_v60  ;;  %2642 = vmatmul.mubr.f32.gmra.mrb[28].mxu0 %v3873_v63 }
 0x233   : > { %1535 = vmatprep.mubr.f32.mxu1 %v3860_v51  ;;  %2644 = vmatprep.mubr.f32.mxu0 %v1176_v7  ;;  %v1328_v7 = vld [vmem:[#allocation15 + $0x3f0] sm:$0xff] }
 0x234   : > { %2790 = vmatprep.subr.bf16.mxu1 %v2789_v0  ;;  %v2801_v26 = vpack.c.bf16 %v1329_v25, %v1328_v7 }
 0x235   : > { %1536 = vmatmul.mubr.f32.gmra.mrb[32].mxu1 %v3849_v38  ;;  %v2799_v38 = vpack.c.bf16 %v1311_v24, %v1310_v16 }
 0x236   : > { %2792 = vmatpush3.bf16.msra.mxu1 %v2791_v20  ;;  %2645 = vmatmul.mubr.f32.gmra.mrb[30].mxu0 %v1201_v4 }
 0x237   : > { %1540 = vmatprep.mubr.f32.mxu1 %v3868_v58  ;;  %2794 = vmatprep.subr.bf16.mxu1 %v2793_v5 }
 0x238   : > { %2649 = vmatprep.mubr.msk.f32.mxu0 %vm1871_vm3, %v492_v28  ;;  %v2314_v28 = vpop.f32.mrb[8].mxu1 }
 0x239   : > { %1541 = vmatmul.mubr.f32.gmra.mrb[34].mxu1 %v3857_v50  ;;  %v2315_v29 = vpop.f32.mrb[9].mxu1 }
 0x23a   : > { %2796 = vmatpush3.bf16.msra.mxu1 %v2795_v27  ;;  %2650 = vmatmul.mubr.msk.f32.vlgmr.msra.gmra.mrb[24].mxu0 %vm1871_vm3, %v493_v35  ;;  %v2316_v30 = vadd.f32 %v2315_v29, %v2314_v28  ;;  %v1185_v35 = vld [vmem:[#allocation3 + $0x90] sm:$0xff] }
 0x23b   : > { %1545 = vmatprep.mubr.f32.mxu1 %v3876_v2  ;;  %2798 = vmatprep.subr.bf16.mxu1 %v2797_v15 }
 0x23c   : > { %2652 = vmatprep.mubr.msk.f32.mxu0 %vm1871_vm3, %v494_v39 }
 0x23d   : > { %1546 = vmatmul.mubr.f32.gmra.mrb[36].mxu1 %v3865_v57 }
 0x23e   : > { %2800 = vmatpush3.bf16.msra.mxu1 %v2799_v38  ;;  %2653 = vmatmul.mubr.msk.f32.gmra.mrb[26].mxu0 %vm1871_vm3, %v495_v40 }
 0x23f   : > { %1550 = vmatprep.mubr.f32.mxu1 %v1160_v17  ;;  %2802 = vmatprep.subr.bf16.mxu1 %v2801_v26 }
 0x240   : > { %2655 = vmatprep.mubr.msk.f32.mxu0 %vm1871_vm3, %v496_v41 }
 0x241   : > { %1551 = vmatmul.mubr.f32.gmra.mrb[38].mxu1 %v3873_v63 }
 0x242   : > { %2804 = vmatpush3.bf16.msra.mxu1 %v2803_v23  ;;  %2656 = vmatmul.mubr.msk.f32.gmra.mrb[28].mxu0 %vm1871_vm3, %v497_v43 }
 0x243   : > { %1725 = vmatprep.mubr.f32.mxu1 %v3804_v46  ;;  %2658 = vmatprep.mubr.msk.f32.mxu0 %vm1871_vm3, %v498_v44 }
 0x245   : > { %1726 = vmatmul.mubr.f32.vlgmr.msra.gmra.mrb[40].mxu1 %v3835_v22 }
 0x246   : > { %1730 = vmatprep.mubr.f32.mxu1 %v3809_v56  ;;  %2659 = vmatmul.mubr.msk.f32.gmra.mrb[30].mxu0 %vm1871_vm3, %v499_v52 }
 0x249   : > { %1731 = vmatmul.mubr.f32.gmra.mrb[42].mxu1 %v3844_v18 }
 0x24a   : > { %1735 = vmatprep.mubr.f32.mxu1 %v3807_v59 }
 0x24d   : > { %1736 = vmatmul.mubr.f32.gmra.mrb[44].mxu1 %v3852_v42 }
 0x24e   : > { %1740 = vmatprep.mubr.f32.mxu1 %v3815_v8 }
 0x251   : > { %1741 = vmatmul.mubr.f32.gmra.mrb[46].mxu1 %v3860_v51 }
 0x252   : > { %1745 = vmatprep.mubr.f32.mxu1 %v3813_v6 }
 0x255   : > { %1746 = vmatmul.mubr.f32.gmra.mrb[48].mxu1 %v3868_v58 }
 0x256   : > { %1750 = vmatprep.mubr.f32.mxu1 %v3830_v21 }
 0x259   : > { %1751 = vmatmul.mubr.f32.gmra.mrb[50].mxu1 %v3876_v2 }
 0x25a   : > { %1755 = vmatprep.mubr.f32.mxu1 %v3825_v19 }
 0x25d   : > { %1756 = vmatmul.mubr.f32.gmra.mrb[52].mxu1 %v1160_v17 }
 0x25e   : > { %1760 = vmatprep.mubr.f32.mxu1 %v1193_v31 }
 0x261   : > { %1761 = vmatmul.mubr.f32.gmra.mrb[54].mxu1 %v1185_v35 }
 0x2dc   : > { %v2317_v36 = vpop.f32.mrb[10].mxu1  ;;  %v2426_v37 = vpop.f32.mrb[8].mxu0 }
 0x2dd   : > { %v2318_v39 = vpop.f32.mrb[11].mxu1  ;;  %v2427_v41 = vpop.f32.mrb[9].mxu0 }
 0x2de   : > { %v2319_v40 = vadd.f32 %v2318_v39, %v2317_v36  ;;  %v2428_v43 = vadd.f32 %v2427_v41, %v2426_v37 }
 0x2e0   : > { %v2320_v44 = vpop.f32.mrb[12].mxu1  ;;  %v2429_v49 = vpop.f32.mrb[10].mxu0 }
 0x2e1   : > { %v2321_v52 = vpop.f32.mrb[13].mxu1  ;;  %v2430_v59 = vpop.f32.mrb[11].mxu0 }
 0x2e2   : > { %v2322_v46 = vadd.f32 %v2321_v52, %v2320_v44  ;;  %v2431_v56 = vadd.f32 %v2430_v59, %v2429_v49 }
 0x2e4   : > { %v2323_v6 = vpop.f32.mrb[14].mxu1  ;;  %v2432_v8 = vpop.f32.mrb[12].mxu0 }
 0x2e5   : > { %v2324_v19 = vpop.f32.mrb[15].mxu1  ;;  %v2433_v22 = vpop.f32.mrb[13].mxu0 }
 0x2e6   : > { %v2325_v21 = vadd.f32 %v2324_v19, %v2323_v6  ;;  %v2434_v18 = vadd.f32 %v2433_v22, %v2432_v8 }
 0x2e8   : > { %v2326_v42 = vpop.f32.mrb[16].mxu1  ;;  %v2435_v50 = vpop.f32.mrb[14].mxu0 }
 0x2e9   : > { %v2327_v51 = vpop.f32.mrb[17].mxu1  ;;  %v2436_v58 = vpop.f32.mrb[15].mxu0 }
 0x2ea   : > { %v2328_v57 = vadd.f32 %v2327_v51, %v2326_v42  ;;  %v2437_v63 = vadd.f32 %v2436_v58, %v2435_v50 }
 0x2ec   : > { %v2329_v2 = vpop.f32.mrb[18].mxu1  ;;  %v2438_v33 = vpop.f32.mrb[16].mxu0 }
 0x2ed   : > { %v2330_v34 = vpop.f32.mrb[19].mxu1  ;;  %v2439_v47 = vpop.f32.mrb[17].mxu0 }
 0x2ee   : > { %v2331_v45 = vadd.f32 %v2330_v34, %v2329_v2  ;;  %v2440_v48 = vadd.f32 %v2439_v47, %v2438_v33 }
 0x2f0   : > { %v2332_v53 = vpop.f32.mrb[20].mxu1  ;;  %v2441_v54 = vpop.f32.mrb[18].mxu0 }
 0x2f1   : > { %v2333_v11 = vpop.f32.mrb[21].mxu1  ;;  %v2442_v60 = vpop.f32.mrb[19].mxu0 }
 0x2f2   : > { %v2334_v55 = vadd.f32 %v2333_v11, %v2332_v53  ;;  %v2443_v61 = vadd.f32 %v2442_v60, %v2441_v54 }
 0x2f4   : > { %v2335_v62 = vpop.f32.mrb[22].mxu1  ;;  %v2444_v0 = vpop.f32.mrb[20].mxu0 }
 0x2f5   : > { %v2336_v1 = vpop.f32.mrb[23].mxu1  ;;  %v2445_v20 = vpop.f32.mrb[21].mxu0 }
 0x2f6   : > { %v2337_v3 = vadd.f32 %v2336_v1, %v2335_v62  ;;  %v2446_v4 = vadd.f32 %v2445_v20, %v2444_v0 }
 0x2f8   : > { %v2370_v5 = vpop.f32.mrb[24].mxu1  ;;  %v2447_v9 = vpop.f32.mrb[22].mxu0 }
 0x2f9   : > { %v2371_v10 = vpop.f32.mrb[25].mxu1  ;;  %v2448_v14 = vpop.f32.mrb[23].mxu0 }
 0x2fa   : > { %v2372_v13 = vadd.f32 %v2371_v10, %v2370_v5  ;;  %v2449_v27 = vadd.f32 %v2448_v14, %v2447_v9 }
 0x2fc   : > { %v1518_v15 = vadd.f32 %v2372_v13, %v2316_v30  ;;  %v2373_v16 = vpop.f32.mrb[26].mxu1 }
 0x2fd   : > { %v2374_v24 = vpop.f32.mrb[27].mxu1 }
 0x2fe   : > { %v2375_v7 = vadd.f32 %v2374_v24, %v2373_v16  ;;  %v1623_v25 = vadd.f32 %v2428_v43, %v1518_v15 }
 0x300   : > { %v1523_v38 = vadd.f32 %v2375_v7, %v2319_v40  ;;  %v2376_v26 = vpop.f32.mrb[28].mxu1 }
 0x301   : > { %v2377_v12 = vpop.f32.mrb[29].mxu1 }
 0x302   : > { %v2378_v32 = vadd.f32 %v2377_v12, %v2376_v26  ;;  %v1628_v17 = vadd.f32 %v2431_v56, %v1523_v38 }
 0x304   : > { %v1528_v23 = vadd.f32 %v2378_v32, %v2322_v46  ;;  %v2379_v28 = vpop.f32.mrb[30].mxu1 }
 0x305   : > { %v2380_v29 = vpop.f32.mrb[31].mxu1 }
 0x306   : > { %v2381_v31 = vadd.f32 %v2380_v29, %v2379_v28  ;;  %v1633_v35 = vadd.f32 %v2434_v18, %v1528_v23 }
 0x308   : > { %v1533_v36 = vadd.f32 %v2381_v31, %v2325_v21  ;;  %v2382_v37 = vpop.f32.mrb[32].mxu1 }
 0x309   : > { %v2383_v39 = vpop.f32.mrb[33].mxu1 }
 0x30a   : > { %v2384_v41 = vadd.f32 %v2383_v39, %v2382_v37  ;;  %v1638_v44 = vadd.f32 %v2437_v63, %v1533_v36 }
 0x30c   : > { %v1538_v30 = vadd.f32 %v2384_v41, %v2328_v57  ;;  %v2385_v49 = vpop.f32.mrb[34].mxu1 }
 0x30d   : > { %v2651_v52 = vpop.f32.mrb[24].mxu0  ;;  %v2386_v59 = vpop.f32.mrb[35].mxu1 }
 0x30e   : > { %v2387_v43 = vadd.f32 %v2386_v59, %v2385_v49  ;;  %v1966_v40 = vpop.f32.mrb[25].mxu0  ;;  %v1643_v6 = vadd.f32 %v2440_v48, %v1538_v30 }
 0x310   : > { %v1543_v8 = vadd.f32 %v2387_v43, %v2331_v45  ;;  %v2388_v19 = vpop.f32.mrb[36].mxu1 }
 0x311   : > { %v2654_v56 = vpop.f32.mrb[26].mxu0  ;;  %v2389_v46 = vpop.f32.mrb[37].mxu1 }
 0x312   : > { %v2390_v22 = vadd.f32 %v2389_v46, %v2388_v19  ;;  %v1976_v42 = vpop.f32.mrb[27].mxu0  ;;  %v1648_v50 = vadd.f32 %v2443_v61, %v1543_v8 }
 0x314   : > { %v1548_v18 = vadd.f32 %v2390_v22, %v2334_v55  ;;  %v2391_v21 = vpop.f32.mrb[38].mxu1 }
 0x315   : > { %v2657_v51 = vpop.f32.mrb[28].mxu0  ;;  %v2392_v58 = vpop.f32.mrb[39].mxu1 }
 0x316   : > { %v2393_v63 = vadd.f32 %v2392_v58, %v2391_v21  ;;  %v1986_v57 = vpop.f32.mrb[29].mxu0  ;;  %v1653_v2 = vadd.f32 %v2446_v4, %v1548_v18 }
 0x318   : > { %v1553_v33 = vadd.f32 %v2393_v63, %v2337_v3  ;;  %v2482_v34 = vpop.f32.mrb[40].mxu1 }
 0x319   : > { %v2483_v47 = vpop.f32.mrb[41].mxu1  ;;  %v2660_v53 = vpop.f32.mrb[30].mxu0 }
 0x31a   : > { %v2484_v48 = vadd.f32 %v2483_v47, %v2482_v34  ;;  %v1996_v45 = vpop.f32.mrb[31].mxu0  ;;  %v1658_v54 = vadd.f32 %v2449_v27, %v1553_v33 }
 0x31c   : > { %v1728_v11 = vadd.f32 %v2484_v48, %v1623_v25  ;;  %v2485_v60 = vpop.f32.mrb[42].mxu1 }
 0x31d   : > { %v2486_v62 = vpop.f32.mrb[43].mxu1 }
 0x31e   : > { %v2846_v0 = vadd.f32 %v1966_v40, %v1728_v11  ;;  %v2487_v61 = vadd.f32 %v2486_v62, %v2485_v60 }
 0x320   : > { %2005 = vst [vmem:[%s3942_s12] sm:$0xff] %v2846_v0  ;;  %v1733_v55 = vadd.f32 %v2487_v61, %v1628_v17  ;;  %v2488_v1 = vpop.f32.mrb[44].mxu1 }
 0x321   : > { %v2489_v3 = vpop.f32.mrb[45].mxu1 }
 0x322   : > { %v2845_v20 = vadd.f32 %v2651_v52, %v1733_v55  ;;  %v2490_v4 = vadd.f32 %v2489_v3, %v2488_v1 }
 0x324   : > { %2006 = vst [vmem:[%s3942_s12 + $0x8] sm:$0xff] %v2845_v20  ;;  %v1738_v5 = vadd.f32 %v2490_v4, %v1633_v35  ;;  %v2491_v9 = vpop.f32.mrb[46].mxu1 }
 0x325   : > { %v2492_v10 = vpop.f32.mrb[47].mxu1 }
 0x326   : > { %v2848_v13 = vadd.f32 %v1976_v42, %v1738_v5  ;;  %v2493_v14 = vadd.f32 %v2492_v10, %v2491_v9 }
 0x328   : > { %2007 = vst [vmem:[%s3942_s12 + $0x10] sm:$0xff] %v2848_v13  ;;  %v1743_v27 = vadd.f32 %v2493_v14, %v1638_v44  ;;  %v2494_v15 = vpop.f32.mrb[48].mxu1 }
 0x329   : > { %v2495_v16 = vpop.f32.mrb[49].mxu1 }
 0x32a   : > { %v2847_v24 = vadd.f32 %v2654_v56, %v1743_v27  ;;  %v2496_v7 = vadd.f32 %v2495_v16, %v2494_v15 }
 0x32c   : > { %2008 = vst [vmem:[%s3942_s12 + $0x18] sm:$0xff] %v2847_v24  ;;  %v1748_v25 = vadd.f32 %v2496_v7, %v1643_v6  ;;  %v2497_v38 = vpop.f32.mrb[50].mxu1 }
 0x32d   : > { %v2498_v26 = vpop.f32.mrb[51].mxu1 }
 0x32e   : > { %v2850_v12 = vadd.f32 %v1986_v57, %v1748_v25  ;;  %v2499_v32 = vadd.f32 %v2498_v26, %v2497_v38 }
 0x330   : > { %2009 = vst [vmem:[%s3942_s12 + $0x20] sm:$0xff] %v2850_v12  ;;  %v1753_v17 = vadd.f32 %v2499_v32, %v1648_v50  ;;  %v2500_v23 = vpop.f32.mrb[52].mxu1 }
 0x331   : > { %v2501_v28 = vpop.f32.mrb[53].mxu1 }
 0x332   : > { %v2849_v29 = vadd.f32 %v2657_v51, %v1753_v17  ;;  %v2502_v31 = vadd.f32 %v2501_v28, %v2500_v23 }
 0x334   : > { %2010 = vst [vmem:[%s3942_s12 + $0x28] sm:$0xff] %v2849_v29  ;;  %v1758_v35 = vadd.f32 %v2502_v31, %v1653_v2  ;;  %v2503_v36 = vpop.f32.mrb[54].mxu1 }
 0x335   : > { %v2504_v37 = vpop.f32.mrb[55].mxu1 }
 0x336   : > { %v2852_v39 = vadd.f32 %v1996_v45, %v1758_v35  ;;  %v2505_v41 = vadd.f32 %v2504_v37, %v2503_v36 }
 0x338   : > { %2011 = vst [vmem:[%s3942_s12 + $0x30] sm:$0xff] %v2852_v39  ;;  %v1763_v44 = vadd.f32 %v2505_v41, %v1658_v54 }
 0x33a   : > { %v2851_v30 = vadd.f32 %v2660_v53, %v1763_v44 }
 0x33c   : > { %2012 = vst [vmem:[%s3942_s12 + $0x38] sm:$0xff] %v2851_v30 }
 0x33d   : > { %3238 = shalt.err (!%p3235_p11)
}
 0x33e   : > { %s3239_s22 = scalar_lea.hbm %s3956_s25, 1024  ;;  %s3243_s12 = scalar_lea.hbm %s4011_s8, 2048 }
 0x33f   : > { %p3240_p12 = scmp.ne.s32.totalorder %s3956_s25, %s3239_s22  ;;  %p3244_p9 = scmp.lt.u32.totalorder %s3956_s25, %s4011_s8 }
 0x340   : > { %p3245_p7 = scmp.lt.u32.totalorder %s3243_s12, %s3239_s22  ;;  %p3247_p4 = scmp.lt.u32.totalorder %s3239_s22, %s3956_s25 }
 0x341   : > { %p3241_p0 = pnand %p3240_p12, %p4039_p13 }
 0x342   : > { %p3246_p10 = por %p3245_p7, %p3244_p9 }
 0x343   : > { %p3242_p5 = pneg %p3241_p0 }
 0x344   : > { %p3248_p1 = por %p3247_p4, %p3246_p10 }
 0x346   : > { %p3249_p3 = pnand %p3248_p1, %p3242_p5 }
 0x348   : > { %3252 = shalt.err (!%p3249_p3)
}
 0x349   : > { %s3321_s20 = smov 128   ;;  %s3322_s16 = smov 8  }
 0x34a   : > { %2907 = dma.vmem_to_hbm [thread:$0]  (%p4039_p13), %s3958_s18, 1024, %s3956_s25, %s2014_s19, %s3321_s20, %s3321_s20, %s3322_s16  }
 0x34b PF: > { %s2042_s11 = sand.u32 1, %s3295_s27   ;;  %p4040_p2 = scmp.ne.s32.totalorder %s4027_s17, 0 }
 0x34c   : > { %p4041_p8 = scmp.ge.s32.totalorder %s3307_s30, 2  ;;  %s2043_s26 = scalar_lea.sflag [#allocation6], %s2042_s11 }
 0x34e   : > { %p2936_p6 = pnand %p4041_p8, %p4040_p2 }
 0x350   : > { %3290 = dma.done.wait (!%p2936_p6), %s2043_s26, 1024  }
 0x351   : > { %3292 = vsyncadd (!%p2936_p6), %s2043_s26, 4294966272  ;;  %p25_p11 = scmp.ge.s32.totalorder %s3570_s15, 4   ;;  %s4042_s27 = smov %s3299_s28 }
 0x352   : > { %s4043_s28 = smov %s3303_s29  ;;  %s4044_s29 = smov %s3582_s14 }
 0x353   : > { %s4045_s30 = smov %s3570_s15  ;;  %27 = sbr.rel (!%p25_p11) target bundleno = 11 (0xb), region = 129 }
 0x35a   :  { %2048 = vsyncpa [#allocation5], 1 }
 0x35b   :  { %2050 = vsyncpa [#allocation5 + $0x1], 1 }
 0x35c   :  { %2051 = vsyncpa [#allocation8], 1 }
 0x35d   :  { %2052 = vsyncpa [#allocation11], 1 }
 0x35e   :  { %2053 = vsyncpa [#allocation14], 1 }
 0x35f   :  { %2054 = vsyncpa [#allocation17], 1 }
 0x360   :  { %2055 = vsyncpa [#allocation6], 1 }
 0x361   :  { %2057 = vsyncpa [#allocation6 + $0x1], 1 }

</bundles_post_ra>
